<compile_context>
chip_gen: v5e
topology: v5e:2x2
jax: 0.10.0
libtpu: 0.0.40
codegen_flags: <defaults>
</compile_context>

<pallas_src>
import numpy as np
import jax
import jax.numpy as jnp
from jax import lax
from jax.experimental import pallas as pl
from jax.experimental.pallas import tpu as pltpu

# ----------------------------- config -----------------------------------
IN_DIM = 32
HIDDEN = 8
CLS_P, CLS_H, CLS_F = 7, 3, 2
N, H, W = 2, 8, 8
L = H * W
M = N * L
P = CLS_P - 1
BN_EPS = 1e-5

UPPER = [1, 2, 3, 4]
LOWER = [5, 6]

# symmetric chain adjacency over the 6 non-background parts
ADJ = np.zeros((P, P), np.int32)
for _i in range(P - 1):
    ADJ[_i, _i + 1] = 1
    ADJ[_i + 1, _i] = 1
EDGE_INDEX = [(int(u), int(v)) for (u, v) in zip(*np.nonzero(ADJ))]   # row-major like torch.nonzero
PART_LIST_LIST = [[] for _ in range(P)]
for (u, v) in EDGE_INDEX:
    PART_LIST_LIST[v].append(u)
MAX_ATT = max(len(nbrs) for nbrs in PART_LIST_LIST) + 1               # = 3

_F32 = jnp.float32
_NT = (((1,), (1,)), ((), ()))    # contract last dims (A @ B^T)


# --------------------------- pallas kernels ------------------------------
def _dep_context_kernel(pfea_ref, coord_cm_ref, coord_lc_ref, hu_ref,
                        wqa_ref, wqb_ref, sq_ref, bq_ref,
                        wka_ref, wkb_ref, sk_ref, bk_ref,
                        wproj_ref, alpha_ref,
                        wp1a_ref, wp1b_ref, s1_ref, b1_ref,
                        wp2_ref, s2_ref, b2_ref,
                        watt_ref, batt_ref, wca_ref, bca_ref,
                        ctx_ref, attm_ref, cattm_ref):
    # One (part p, batch b) Dep_Context + att conv + grouped ctx-att conv.
    pf = pfea_ref[0]            # (Cin, L)  channel-major image feature
    cd_cm = coord_cm_ref[...]   # (8,  L)
    cd_lc = coord_lc_ref[...]   # (L,  8)
    hu = hu_ref[0, 0]           # (L, hd)   row-major node feature

    # img_conv / node_conv: conv(cat([x, coord])) + BN + ReLU, concat removed via split weights
    q = jnp.maximum(
        (jnp.dot(wqa_ref[0], pf, preferred_element_type=_F32)
         + jnp.dot(wqb_ref[0], cd_cm, preferred_element_type=_F32))
        * sq_ref[0] + bq_ref[0], 0.0)                                     # (Cin, L)
    k = jnp.maximum(
        (jnp.dot(hu, wka_ref[0], preferred_element_type=_F32)
         + jnp.dot(cd_lc, wkb_ref[0], preferred_element_type=_F32))
        * sk_ref[0] + bk_ref[0], 0.0)                                     # (L, hd)

    proj = jnp.dot(wproj_ref[0], q, preferred_element_type=_F32)          # (hd, L)
    # energy_t[j, l] = energy[l, j] = <project1[l, :], key[j, :]>
    energy_t = jnp.dot(k, proj, preferred_element_type=_F32)              # (L_key, L_query)
    emax = jnp.max(energy_t, axis=0, keepdims=True)
    e = jnp.exp(energy_t - emax)
    att_t = e * pl.reciprocal(jnp.sum(e, axis=0, keepdims=True), approx=True)

    # co_context[c, j] = sum_l p_fea[c, l] * attention[l, j]   (== torch.bmm(p_fea, attention))
    ctx = lax.dot_general(pf, att_t, _NT, preferred_element_type=_F32)    # (Cin, L)
    co = alpha_ref[0] * ctx + pf

    # project: conv(2*Cin -> Cin)+BN+ReLU, conv(Cin -> 2*hd)+BN+ReLU (split-weight concat)
    h1 = jnp.maximum(
        (jnp.dot(wp1a_ref[0], co, preferred_element_type=_F32)
         + jnp.dot(wp1b_ref[0], pf, preferred_element_type=_F32))
        * s1_ref[0] + b1_ref[0], 0.0)                                     # (Cin, L)
    context = jnp.maximum(
        jnp.dot(wp2_ref[0], h1, preferred_element_type=_F32)
        * s2_ref[0] + b2_ref[0], 0.0)                                     # (2hd, L)

    ctx_ref[0, 0] = context
    fdep = context[HIDDEN:, :]                                            # (hd, L)
    attm_ref[0, 0] = jnp.dot(watt_ref[0], fdep, preferred_element_type=_F32) + batt_ref[0]
    cattm_ref[0, 0] = jnp.dot(wca_ref[0], context, preferred_element_type=_F32) + bca_ref[0]


def dep_context_batched(p_fea_ncl, coord_cm, coord_lc, hu_pnlh, dp):
    n, cin, l = p_fea_ncl.shape
    p, _, _, hd = hu_pnlh.shape

    wmap = lambda pi, bi: (pi, 0, 0)
    bmap = lambda pi, bi: (bi, 0, 0)
    cmap = lambda pi, bi: (0, 0)
    pbmap = lambda pi, bi: (pi, bi, 0, 0)

    weight_keys = ['wqa', 'wqb', 'sq', 'bq', 'wka', 'wkb', 'sk', 'bk',
                   'W', 'alpha', 'wp1a', 'wp1b', 's1', 'b1',
                   'wp2', 's2', 'b2', 'watt', 'batt', 'wca', 'bca']
    w_args = [dp[kk] for kk in weight_keys]

    in_specs = ([pl.BlockSpec((1, cin, l), bmap),
                 pl.BlockSpec((8, l), cmap),
                 pl.BlockSpec((l, 8), cmap),
                 pl.BlockSpec((1, 1, l, hd), pbmap)]
                + [pl.BlockSpec((1,) + a.shape[1:], wmap) for a in w_args])
    out_specs = (pl.BlockSpec((1, 1, 2 * hd, l), pbmap),
                 pl.BlockSpec((1, 1, MAX_ATT, l), pbmap),
                 pl.BlockSpec((1, 1, 2, l), pbmap))
    out_shape = (jax.ShapeDtypeStruct((p, n, 2 * hd, l), _F32),
                 jax.ShapeDtypeStruct((p, n, MAX_ATT, l), _F32),
                 jax.ShapeDtypeStruct((p, n, 2, l), _F32))
    return pl.pallas_call(
        _dep_context_kernel,
        grid=(p, n),
        in_specs=in_specs,
        out_specs=out_specs,
        out_shape=out_shape,
        compiler_params=pltpu.CompilerParams(
            dimension_semantics=("parallel", "parallel")),
    )(p_fea_ncl, coord_cm, coord_lc, hu_pnlh, *w_args)


def _block2_kernel(a_ref, b_ref, w1a_ref, w1b_ref, s1_ref, bb1_ref,
                   w2_ref, s2_ref, bb2_ref, o_ref):
    # conv(cat([a, b])) + BN + ReLU ; conv + BN + ReLU   (channel-major, split weights)
    a = a_ref[0]                                        # (hd, M)
    b = b_ref[0]                                        # (hd, M)
    h1 = jnp.maximum(
        (jnp.dot(w1a_ref[0], a, preferred_element_type=_F32)
         + jnp.dot(w1b_ref[0], b, preferred_element_type=_F32))
        * s1_ref[0] + bb1_ref[0], 0.0)                  # (2hd, M)
    o_ref[0] = jnp.maximum(
        jnp.dot(w2_ref[0], h1, preferred_element_type=_F32)
        * s2_ref[0] + bb2_ref[0], 0.0)                  # (hd, M)


def block2_batched(a_stack, b_stack, wd):
    s, hd, m = a_stack.shape
    smap = lambda i: (i, 0, 0)
    args = (a_stack, b_stack, wd['w1a'], wd['w1b'], wd['s1'], wd['b1'],
            wd['w2'], wd['s2'], wd['b2'])
    return pl.pallas_call(
        _block2_kernel,
        grid=(s,),
        in_specs=[pl.BlockSpec((1,) + a.shape[1:], smap) for a in args],
        out_specs=pl.BlockSpec((1, hd, m), smap),
        out_shape=jax.ShapeDtypeStruct((s, hd, m), _F32),
        compiler_params=pltpu.CompilerParams(dimension_semantics=("parallel",)),
    )(*args)


def _convgru_kernel(msg_ref, h_ref, wx_ref, whrz_ref, whc_ref, bg_ref, bc_ref, o_ref):
    hd = HIDDEN
    msg = msg_ref[0]                                               # (hd, M)
    h = h_ref[0]                                                   # (hd, M)
    gx = jnp.dot(wx_ref[0], msg, preferred_element_type=_F32)      # (3hd, M) fused r|z|cand
    gh = jnp.dot(whrz_ref[0], h, preferred_element_type=_F32)      # (2hd, M) fused r|z
    rz = jax.nn.sigmoid(gx[:2 * hd] + gh + bg_ref[0])
    r = rz[:hd]
    z = rz[hd:]
    c = jnp.tanh(gx[2 * hd:]
                 + jnp.dot(whc_ref[0], r * h, preferred_element_type=_F32)
                 + bc_ref[0])
    o_ref[0] = (1.0 - z) * h + z * c


def conv_gru_batched(msg_stack, h_stack, g):
    p, hd, m = msg_stack.shape
    smap = lambda i: (i, 0, 0)
    args = (msg_stack, h_stack, g['wx'], g['whrz'], g['whc'], g['bg'], g['bc'])
    return pl.pallas_call(
        _convgru_kernel,
        grid=(p,),
        in_specs=[pl.BlockSpec((1,) + a.shape[1:], smap) for a in args],
        out_specs=pl.BlockSpec((1, hd, m), smap),
        out_shape=jax.ShapeDtypeStruct((p, hd, m), _F32),
        compiler_params=pltpu.CompilerParams(dimension_semantics=("parallel",)),
    )(*args)


# --------------------------- parameters ----------------------------------
class ParamGen:
    def __init__(self, key):
        self.key = key

    def take(self, shape, scale=0.1):
        self.key, sub = jax.random.split(self.key)
        return jax.random.normal(sub, shape, _F32) * scale


def init_params(key):
    pg = ParamGen(key)
    hd, cin = HIDDEN, IN_DIM

    def bn_col(c):       # eval-mode InPlaceABN affine, channel-major (c, 1)
        return (jnp.full((c, 1), 1.0 / np.sqrt(1.0 + BN_EPS), _F32),
                jnp.zeros((c, 1), _F32))

    def bn_col_stack(c):
        s, b = bn_col(c)
        return jnp.tile(s[None], (P, 1, 1)), jnp.tile(b[None], (P, 1, 1))

    def bn_row_stack(c):  # row-major (1, c) per part
        return (jnp.full((P, 1, c), 1.0 / np.sqrt(1.0 + BN_EPS), _F32),
                jnp.zeros((P, 1, c), _F32))

    sq, bq = bn_col_stack(cin)
    sk, bk = bn_row_stack(hd)
    s1, b1 = bn_col_stack(cin)
    s2, b2 = bn_col_stack(2 * hd)

    watt, batt, wca = [], [], []
    for i in range(P):
        kch = len(PART_LIST_LIST[i]) + 1
        watt.append(jnp.pad(pg.take((kch, hd)), ((0, MAX_ATT - kch), (0, 0))))
        batt.append(jnp.pad(pg.take((kch, 1), 0.01), ((0, MAX_ATT - kch), (0, 0))))
        # grouped conv (2*hd -> 2, groups=2) as block-diagonal (2, 2hd) weight
        w0 = pg.take((1, hd))
        w1 = pg.take((1, hd))
        z = jnp.zeros((1, hd), _F32)
        wca.append(jnp.concatenate([jnp.concatenate([w0, z], 1),
                                    jnp.concatenate([z, w1], 1)], 0))

    dep = dict(
        wqa=pg.take((P, cin, cin)), wqb=pg.take((P, cin, 8)), sq=sq, bq=bq,
        wka=pg.take((P, hd, hd)), wkb=pg.take((P, 8, hd)), sk=sk, bk=bk,
        W=jnp.ones((P, hd, cin), _F32),            # nn.Parameter(torch.ones(in_dim, hidden))^T
        alpha=jnp.ones((P, 1, 1), _F32),
        wp1a=pg.take((P, cin, cin)), wp1b=pg.take((P, cin, cin)), s1=s1, b1=b1,
        wp2=pg.take((P, 2 * hd, cin)), s2=s2, b2=b2,
        watt=jnp.stack(watt), batt=jnp.stack(batt),
        wca=jnp.stack(wca), bca=pg.take((P, 2, 1), 0.01))

    def make_fh():         # conv(2hd->2hd)+BN+ReLU ; conv(2hd->hd)+BN+ReLU, split first weight
        m1s, m1b = bn_col(2 * hd)
        m2s, m2b = bn_col(hd)
        return dict(w1a=pg.take((2 * hd, hd)), w1b=pg.take((2 * hd, hd)),
                    s1=m1s, b1=m1b,
                    w2=pg.take((hd, 2 * hd)), s2=m2s, b2=m2b)

    return dict(
        dep=dep,
        decomp_u=dict(att_w=pg.take((len(UPPER) + 1, hd)),
                      att_b=pg.take((len(UPPER) + 1, 1), 0.01),
                      fh=make_fh()),
        decomp_l=dict(att_w=pg.take((len(LOWER) + 1, hd)),
                      att_b=pg.take((len(LOWER) + 1, 1), 0.01),
                      fh=make_fh()),
        part_dp=make_fh(),
        gru=dict(wx=pg.take((P, 3 * hd, hd)), whrz=pg.take((P, 2 * hd, hd)),
                 whc=pg.take((P, hd, hd)), bg=pg.take((P, 2 * hd, 1), 0.01),
                 bc=pg.take((P, hd, 1), 0.01)))


# --------------------------- helpers --------------------------------------
def generate_spatial_batch(fh, fw):
    val = np.zeros((fh, fw, 8), np.float32)
    for hh in range(fh):
        for ww in range(fw):
            xmin = ww / fw * 2 - 1
            xmax = (ww + 1) / fw * 2 - 1
            xctr = (xmin + xmax) / 2
            ymin = hh / fh * 2 - 1
            ymax = (hh + 1) / fh * 2 - 1
            yctr = (ymin + ymax) / 2
            val[hh, ww, :] = [xmin, ymin, xmax, ymax, xctr, yctr, 1 / fw, 1 / fh]
    return val


# --------------------------- Part_Graph forward ----------------------------
def part_graph_forward(params, xf, xh_list, xp_list, xp):
    n, _, h, w = xp.shape
    l = h * w
    m = n * l
    hd = HIDDEN

    # ---- layouts: (N, C, L) slabs for attention, (C, M) channel-major for pointwise ----
    p_fea_ncl = xp.reshape(n, IN_DIM, l)
    xp_pnhl = jnp.stack([x.reshape(n, hd, l) for x in xp_list])           # (P, N, hd, L)
    hu_pnlh = xp_pnhl.transpose(0, 1, 3, 2)                               # (P, N, L, hd)
    xp_cm = xp_pnhl.transpose(0, 2, 1, 3).reshape(P, hd, m)               # (P, hd, M)
    xh_u_cm = xh_list[0].reshape(n, hd, l).transpose(1, 0, 2).reshape(hd, m)
    xh_l_cm = xh_list[1].reshape(n, hd, l).transpose(1, 0, 2).reshape(hd, m)

    # TODO(synk): original uses a fixed 60x60 coord grid; generalized to (H, W) here.
    coord_np = generate_spatial_batch(h, w).reshape(l, 8)
    coord_lc = jnp.asarray(coord_np)
    coord_cm = jnp.asarray(np.ascontiguousarray(coord_np.T))

    # ---- kernel 1: batched Dep_Context (+ per-part att / grouped ctx-att convs) ----
    ctx_pncl, attm_pncl, cattm_pncl = dep_context_batched(
        p_fea_ncl, coord_cm, coord_lc, hu_pnlh, params['dep'])
    fdep_cm = ctx_pncl[:, :, hd:, :].transpose(0, 2, 1, 3).reshape(P, hd, m)

    # ---- tiny XLA glue: decomposition attention maps + edge attention softmaxes ----
    du, dl = params['decomp_u'], params['decomp_l']
    map_u_cm = jnp.dot(du['att_w'], xh_u_cm) + du['att_b']                # (5, M)
    map_l_cm = jnp.dot(dl['att_w'], xh_l_cm) + dl['att_b']                # (3, M)
    datt_u = jax.nn.softmax(map_u_cm, axis=0)
    datt_l = jax.nn.softmax(map_l_cm, axis=0)
    att_soft = [jax.nn.softmax(attm_pncl[i, :, :len(PART_LIST_LIST[i]) + 1, :], axis=1)
                for i in range(P)]

    # ---- kernel 2: 6 Decomposition conv_fh slots + 10 Part_Dependency edge slots ----
    a_slots, b_slots, wsel = [], [], []
    for idx, part in enumerate(UPPER):
        a_slots.append(xh_u_cm * datt_u[idx + 1:idx + 2])
        b_slots.append(xp_cm[part - 1])
        wsel.append(0)
    for idx, part in enumerate(LOWER):
        a_slots.append(xh_l_cm * datt_l[idx + 1:idx + 2])
        b_slots.append(xp_cm[part - 1])
        wsel.append(1)
    for (u, v) in EDGE_INDEX:
        ch = 1 + PART_LIST_LIST[u].index(v)
        att_uv = att_soft[u][:, ch, :].reshape(1, m)
        a_slots.append(att_uv * fdep_cm[u])
        b_slots.append(xp_cm[v])
        wsel.append(2)
    a_stack = jnp.stack(a_slots)                                          # (16, hd, M)
    b_stack = jnp.stack(b_slots)

    fh_sets = [params['decomp_u']['fh'], params['decomp_l']['fh'], params['part_dp']]
    slot_w = {kk: jnp.stack([fh_sets[s][kk] for s in wsel])
              for kk in ('w1a', 'w1b', 's1', 'b1', 'w2', 's2', 'b2')}
    block2_out = block2_batched(a_stack, b_stack, slot_w)                 # (16, hd, M)

    # ---- per-part messages + kernel 3: batched ConvGRU node updates ----
    msgs = []
    for v in range(P):
        msg = block2_out[v]                                               # decomposition slot
        for e_i, (u, dst) in enumerate(EDGE_INDEX):
            if dst == v:
                msg = msg + block2_out[P + e_i]
        msgs.append(msg)
    msg_stack = jnp.stack(msgs)                                           # (P, hd, M)
    xp_new_cm = conv_gru_batched(msg_stack, xp_cm, params['gru'])         # (P, hd, M)

    # ---- back to NCHW ----
    xp_new = xp_new_cm.reshape(P, hd, n, h, w).transpose(0, 2, 1, 3, 4)
    xp_list_new = [xp_new[i] for i in range(P)]
    decomp_pu_att_map = map_u_cm.reshape(-1, n, h, w).transpose(1, 0, 2, 3)
    decomp_pl_att_map = map_l_cm.reshape(-1, n, h, w).transpose(1, 0, 2, 3)
    fdep_att_list = [attm_pncl[i, :, :len(PART_LIST_LIST[i]) + 1, :].reshape(n, -1, h, w)
                     for i in range(P)]
    context_att_list = [cattm_pncl[i].reshape(n, 2, h, w) for i in range(P)]
    return (xp_list_new, decomp_pu_att_map, decomp_pl_att_map,
            fdep_att_list, context_att_list)


part_graph_forward_jit = jax.jit(part_graph_forward)


# ------------------------------- main --------------------------------------
if __name__ == "__main__":
    root = jax.random.PRNGKey(0)
    kp, kin = jax.random.split(root)
    params = init_params(kp)

    keys = iter(jax.random.split(kin, 16))
    mk = lambda shape: jax.random.normal(next(keys), shape, _F32)

    xp_list = [mk((N, HIDDEN, H, W)) for _ in range(P)]
    xh_list = [mk((N, HIDDEN, H, W)) for _ in range(CLS_H - 1)]
    xf = mk((N, HIDDEN, H, W))
    xp = mk((N, IN_DIM, H, W))

    out = part_graph_forward_jit(params, xf, xh_list, xp_list, xp)
    out = jax.block_until_ready(out)
    print("KERNEL_OK")
</pallas_src>

<mosaic_0001>
module attributes {stable_mosaic.version = 11 : i64} {
  func.func @_dep_context_kernel(%arg0: i32, %arg1: i32, %arg2: memref<1x32x64xf32, #tpu.memory_space<vmem>>, %arg3: memref<8x64xf32, #tpu.memory_space<vmem>>, %arg4: memref<64x8xf32, #tpu.memory_space<vmem>>, %arg5: memref<1x1x64x8xf32, #tpu.memory_space<vmem>>, %arg6: memref<1x32x32xf32, #tpu.memory_space<vmem>>, %arg7: memref<1x32x8xf32, #tpu.memory_space<vmem>>, %arg8: memref<1x32x1xf32, #tpu.memory_space<vmem>>, %arg9: memref<1x32x1xf32, #tpu.memory_space<vmem>>, %arg10: memref<1x8x8xf32, #tpu.memory_space<vmem>>, %arg11: memref<1x8x8xf32, #tpu.memory_space<vmem>>, %arg12: memref<1x1x8xf32, #tpu.memory_space<vmem>>, %arg13: memref<1x1x8xf32, #tpu.memory_space<vmem>>, %arg14: memref<1x8x32xf32, #tpu.memory_space<vmem>>, %arg15: memref<1x1x1xf32, #tpu.memory_space<vmem>>, %arg16: memref<1x32x32xf32, #tpu.memory_space<vmem>>, %arg17: memref<1x32x32xf32, #tpu.memory_space<vmem>>, %arg18: memref<1x32x1xf32, #tpu.memory_space<vmem>>, %arg19: memref<1x32x1xf32, #tpu.memory_space<vmem>>, %arg20: memref<1x16x32xf32, #tpu.memory_space<vmem>>, %arg21: memref<1x16x1xf32, #tpu.memory_space<vmem>>, %arg22: memref<1x16x1xf32, #tpu.memory_space<vmem>>, %arg23: memref<1x3x8xf32, #tpu.memory_space<vmem>>, %arg24: memref<1x3x1xf32, #tpu.memory_space<vmem>>, %arg25: memref<1x2x16xf32, #tpu.memory_space<vmem>>, %arg26: memref<1x2x1xf32, #tpu.memory_space<vmem>>, %arg27: memref<1x1x16x64xf32, #tpu.memory_space<vmem>>, %arg28: memref<1x1x3x64xf32, #tpu.memory_space<vmem>>, %arg29: memref<1x1x2x64xf32, #tpu.memory_space<vmem>>) attributes {dimension_semantics = [#tpu.dimension_semantics<parallel>, #tpu.dimension_semantics<parallel>], iteration_bounds = array<i64: 6, 2>, scalar_prefetch = 0 : i64, scratch_operands = 0 : i64, tpu.core_type = #tpu.core_type<tc>, window_params = [{transform_indices = @transform_0, window_bounds = array<i64: 1, 32, 64>}, {pipeline_mode = #tpu.pipeline_mode<synchronous>, transform_indices = @transform_1, window_bounds = array<i64: 8, 64>}, {pipeline_mode = #tpu.pipeline_mode<synchronous>, transform_indices = @transform_2, window_bounds = array<i64: 64, 8>}, {transform_indices = @transform_3, window_bounds = array<i64: 1, 1, 64, 8>}, {transform_indices = @transform_4, window_bounds = array<i64: 1, 32, 32>}, {transform_indices = @transform_5, window_bounds = array<i64: 1, 32, 8>}, {transform_indices = @transform_6, window_bounds = array<i64: 1, 32, 1>}, {transform_indices = @transform_7, window_bounds = array<i64: 1, 32, 1>}, {transform_indices = @transform_8, window_bounds = array<i64: 1, 8, 8>}, {transform_indices = @transform_9, window_bounds = array<i64: 1, 8, 8>}, {transform_indices = @transform_10, window_bounds = array<i64: 1, 1, 8>}, {transform_indices = @transform_11, window_bounds = array<i64: 1, 1, 8>}, {transform_indices = @transform_12, window_bounds = array<i64: 1, 8, 32>}, {transform_indices = @transform_13, window_bounds = array<i64: 1, 1, 1>}, {transform_indices = @transform_14, window_bounds = array<i64: 1, 32, 32>}, {transform_indices = @transform_15, window_bounds = array<i64: 1, 32, 32>}, {transform_indices = @transform_16, window_bounds = array<i64: 1, 32, 1>}, {transform_indices = @transform_17, window_bounds = array<i64: 1, 32, 1>}, {transform_indices = @transform_18, window_bounds = array<i64: 1, 16, 32>}, {transform_indices = @transform_19, window_bounds = array<i64: 1, 16, 1>}, {transform_indices = @transform_20, window_bounds = array<i64: 1, 16, 1>}, {transform_indices = @transform_21, window_bounds = array<i64: 1, 3, 8>}, {transform_indices = @transform_22, window_bounds = array<i64: 1, 3, 1>}, {transform_indices = @transform_23, window_bounds = array<i64: 1, 2, 16>}, {transform_indices = @transform_24, window_bounds = array<i64: 1, 2, 1>}, {transform_indices = @transform_25, window_bounds = array<i64: 1, 1, 16, 64>}, {transform_indices = @transform_26, window_bounds = array<i64: 1, 1, 3, 64>}, {transform_indices = @transform_27, window_bounds = array<i64: 1, 1, 2, 64>}]} {
    %c0 = arith.constant 0 : index
    %c0_0 = arith.constant 0 : index
    %c0_1 = arith.constant 0 : index
    %0 = vector.load %arg2[%c0, %c0_0, %c0_1] : memref<1x32x64xf32, #tpu.memory_space<vmem>>, vector<1x32x64xf32>
    %1 = vector.shape_cast %0 : vector<1x32x64xf32> to vector<32x64xf32>
    %c0_2 = arith.constant 0 : index
    %c0_3 = arith.constant 0 : index
    %2 = vector.load %arg3[%c0_2, %c0_3] : memref<8x64xf32, #tpu.memory_space<vmem>>, vector<8x64xf32>
    %c0_4 = arith.constant 0 : index
    %c0_5 = arith.constant 0 : index
    %3 = vector.load %arg4[%c0_4, %c0_5] : memref<64x8xf32, #tpu.memory_space<vmem>>, vector<64x8xf32>
    %c0_6 = arith.constant 0 : index
    %c0_7 = arith.constant 0 : index
    %c0_8 = arith.constant 0 : index
    %c0_9 = arith.constant 0 : index
    %4 = vector.load %arg5[%c0_6, %c0_7, %c0_8, %c0_9] : memref<1x1x64x8xf32, #tpu.memory_space<vmem>>, vector<1x1x64x8xf32>
    %5 = vector.shape_cast %4 : vector<1x1x64x8xf32> to vector<64x8xf32>
    %c0_10 = arith.constant 0 : index
    %c0_11 = arith.constant 0 : index
    %c0_12 = arith.constant 0 : index
    %6 = vector.load %arg6[%c0_10, %c0_11, %c0_12] : memref<1x32x32xf32, #tpu.memory_space<vmem>>, vector<1x32x32xf32>
    %7 = vector.shape_cast %6 : vector<1x32x32xf32> to vector<32x32xf32>
    %cst = arith.constant dense<0.000000e+00> : vector<32x64xf32>
    %8 = tpu.matmul %7, %1, %cst {dimension_numbers = #tpu.dot_dimension_numbers<[1], [0], [0], [1], [0, 0, 1, 1], [], []>} : vector<32x32xf32>, vector<32x64xf32>, vector<32x64xf32> -> vector<32x64xf32>
    %c0_13 = arith.constant 0 : index
    %c0_14 = arith.constant 0 : index
    %c0_15 = arith.constant 0 : index
    %9 = vector.load %arg7[%c0_13, %c0_14, %c0_15] : memref<1x32x8xf32, #tpu.memory_space<vmem>>, vector<1x32x8xf32>
    %10 = vector.shape_cast %9 : vector<1x32x8xf32> to vector<32x8xf32>
    %cst_16 = arith.constant dense<0.000000e+00> : vector<32x64xf32>
    %11 = tpu.matmul %10, %2, %cst_16 {dimension_numbers = #tpu.dot_dimension_numbers<[1], [0], [0], [1], [0, 0, 1, 1], [], []>} : vector<32x8xf32>, vector<8x64xf32>, vector<32x64xf32> -> vector<32x64xf32>
    %12 = arith.addf %8, %11 : vector<32x64xf32>
    %c0_17 = arith.constant 0 : index
    %c0_18 = arith.constant 0 : index
    %c0_19 = arith.constant 0 : index
    %13 = vector.load %arg8[%c0_17, %c0_18, %c0_19] : memref<1x32x1xf32, #tpu.memory_space<vmem>>, vector<1x32x1xf32>
    %14 = vector.shape_cast %13 : vector<1x32x1xf32> to vector<32x1xf32>
    %15 = vector.broadcast %14 : vector<32x1xf32> to vector<32x64xf32>
    %16 = arith.mulf %12, %15 : vector<32x64xf32>
    %c0_20 = arith.constant 0 : index
    %c0_21 = arith.constant 0 : index
    %c0_22 = arith.constant 0 : index
    %17 = vector.load %arg9[%c0_20, %c0_21, %c0_22] : memref<1x32x1xf32, #tpu.memory_space<vmem>>, vector<1x32x1xf32>
    %18 = vector.shape_cast %17 : vector<1x32x1xf32> to vector<32x1xf32>
    %19 = vector.broadcast %18 : vector<32x1xf32> to vector<32x64xf32>
    %20 = arith.addf %16, %19 : vector<32x64xf32>
    %cst_23 = arith.constant 0.000000e+00 : f32
    %21 = vector.broadcast %cst_23 : f32 to vector<32x64xf32>
    %22 = arith.maximumf %20, %21 : vector<32x64xf32>
    %c0_24 = arith.constant 0 : index
    %c0_25 = arith.constant 0 : index
    %c0_26 = arith.constant 0 : index
    %23 = vector.load %arg10[%c0_24, %c0_25, %c0_26] : memref<1x8x8xf32, #tpu.memory_space<vmem>>, vector<1x8x8xf32>
    %24 = vector.shape_cast %23 : vector<1x8x8xf32> to vector<8x8xf32>
    %cst_27 = arith.constant dense<0.000000e+00> : vector<64x8xf32>
    %25 = tpu.matmul %5, %24, %cst_27 {dimension_numbers = #tpu.dot_dimension_numbers<[1], [0], [0], [1], [0, 0, 1, 1], [], []>} : vector<64x8xf32>, vector<8x8xf32>, vector<64x8xf32> -> vector<64x8xf32>
    %c0_28 = arith.constant 0 : index
    %c0_29 = arith.constant 0 : index
    %c0_30 = arith.constant 0 : index
    %26 = vector.load %arg11[%c0_28, %c0_29, %c0_30] : memref<1x8x8xf32, #tpu.memory_space<vmem>>, vector<1x8x8xf32>
    %27 = vector.shape_cast %26 : vector<1x8x8xf32> to vector<8x8xf32>
    %cst_31 = arith.constant dense<0.000000e+00> : vector<64x8xf32>
    %28 = tpu.matmul %3, %27, %cst_31 {dimension_numbers = #tpu.dot_dimension_numbers<[1], [0], [0], [1], [0, 0, 1, 1], [], []>} : vector<64x8xf32>, vector<8x8xf32>, vector<64x8xf32> -> vector<64x8xf32>
    %29 = arith.addf %25, %28 : vector<64x8xf32>
    %c0_32 = arith.constant 0 : index
    %c0_33 = arith.constant 0 : index
    %c0_34 = arith.constant 0 : index
    %30 = vector.load %arg12[%c0_32, %c0_33, %c0_34] : memref<1x1x8xf32, #tpu.memory_space<vmem>>, vector<1x1x8xf32>
    %31 = vector.shape_cast %30 : vector<1x1x8xf32> to vector<1x8xf32>
    %32 = vector.broadcast %31 : vector<1x8xf32> to vector<64x8xf32>
    %33 = arith.mulf %29, %32 : vector<64x8xf32>
    %c0_35 = arith.constant 0 : index
    %c0_36 = arith.constant 0 : index
    %c0_37 = arith.constant 0 : index
    %34 = vector.load %arg13[%c0_35, %c0_36, %c0_37] : memref<1x1x8xf32, #tpu.memory_space<vmem>>, vector<1x1x8xf32>
    %35 = vector.shape_cast %34 : vector<1x1x8xf32> to vector<1x8xf32>
    %36 = vector.broadcast %35 : vector<1x8xf32> to vector<64x8xf32>
    %37 = arith.addf %33, %36 : vector<64x8xf32>
    %cst_38 = arith.constant 0.000000e+00 : f32
    %38 = vector.broadcast %cst_38 : f32 to vector<64x8xf32>
    %39 = arith.maximumf %37, %38 : vector<64x8xf32>
    %c0_39 = arith.constant 0 : index
    %c0_40 = arith.constant 0 : index
    %c0_41 = arith.constant 0 : index
    %40 = vector.load %arg14[%c0_39, %c0_40, %c0_41] : memref<1x8x32xf32, #tpu.memory_space<vmem>>, vector<1x8x32xf32>
    %41 = vector.shape_cast %40 : vector<1x8x32xf32> to vector<8x32xf32>
    %cst_42 = arith.constant dense<0.000000e+00> : vector<8x64xf32>
    %42 = tpu.matmul %41, %22, %cst_42 {dimension_numbers = #tpu.dot_dimension_numbers<[1], [0], [0], [1], [0, 0, 1, 1], [], []>} : vector<8x32xf32>, vector<32x64xf32>, vector<8x64xf32> -> vector<8x64xf32>
    %cst_43 = arith.constant dense<0.000000e+00> : vector<64x64xf32>
    %43 = tpu.matmul %39, %42, %cst_43 {dimension_numbers = #tpu.dot_dimension_numbers<[1], [0], [0], [1], [0, 0, 1, 1], [], []>} : vector<64x8xf32>, vector<8x64xf32>, vector<64x64xf32> -> vector<64x64xf32>
    %cst_44 = arith.constant dense<0xFF800000> : vector<64xf32>
    %44 = vector.multi_reduction <maximumf>, %43, %cst_44 [0] : vector<64x64xf32> to vector<64xf32>
    %45 = vector.shape_cast %44 : vector<64xf32> to vector<1x64xf32>
    %46 = vector.broadcast %45 : vector<1x64xf32> to vector<64x64xf32>
    %47 = arith.subf %43, %46 : vector<64x64xf32>
    %48 = math.exp %47 : vector<64x64xf32>
    %cst_45 = arith.constant dense<0.000000e+00> : vector<64xf32>
    %49 = vector.multi_reduction <add>, %48, %cst_45 [0] : vector<64x64xf32> to vector<64xf32>
    %50 = vector.shape_cast %49 : vector<64xf32> to vector<1x64xf32>
    %51 = tpu.reciprocal %50 {approx = true} : vector<1x64xf32> -> vector<1x64xf32>
    %52 = vector.broadcast %51 : vector<1x64xf32> to vector<64x64xf32>
    %53 = arith.mulf %48, %52 : vector<64x64xf32>
    %cst_46 = arith.constant dense<0.000000e+00> : vector<32x64xf32>
    %54 = tpu.matmul %1, %53, %cst_46 {dimension_numbers = #tpu.dot_dimension_numbers<[1], [1], [0], [0], [0, 0, 1, 0], [], []>} : vector<32x64xf32>, vector<64x64xf32>, vector<32x64xf32> -> vector<32x64xf32>
    %c0_47 = arith.constant 0 : index
    %c0_48 = arith.constant 0 : index
    %c0_49 = arith.constant 0 : index
    %55 = vector.load %arg15[%c0_47, %c0_48, %c0_49] : memref<1x1x1xf32, #tpu.memory_space<vmem>>, vector<1x1x1xf32>
    %56 = vector.shape_cast %55 : vector<1x1x1xf32> to vector<1x1xf32>
    %57 = vector.broadcast %56 : vector<1x1xf32> to vector<32x64xf32>
    %58 = arith.mulf %57, %54 : vector<32x64xf32>
    %59 = arith.addf %58, %1 : vector<32x64xf32>
    %c0_50 = arith.constant 0 : index
    %c0_51 = arith.constant 0 : index
    %c0_52 = arith.constant 0 : index
    %60 = vector.load %arg16[%c0_50, %c0_51, %c0_52] : memref<1x32x32xf32, #tpu.memory_space<vmem>>, vector<1x32x32xf32>
    %61 = vector.shape_cast %60 : vector<1x32x32xf32> to vector<32x32xf32>
    %cst_53 = arith.constant dense<0.000000e+00> : vector<32x64xf32>
    %62 = tpu.matmul %61, %59, %cst_53 {dimension_numbers = #tpu.dot_dimension_numbers<[1], [0], [0], [1], [0, 0, 1, 1], [], []>} : vector<32x32xf32>, vector<32x64xf32>, vector<32x64xf32> -> vector<32x64xf32>
    %c0_54 = arith.constant 0 : index
    %c0_55 = arith.constant 0 : index
    %c0_56 = arith.constant 0 : index
    %63 = vector.load %arg17[%c0_54, %c0_55, %c0_56] : memref<1x32x32xf32, #tpu.memory_space<vmem>>, vector<1x32x32xf32>
    %64 = vector.shape_cast %63 : vector<1x32x32xf32> to vector<32x32xf32>
    %cst_57 = arith.constant dense<0.000000e+00> : vector<32x64xf32>
    %65 = tpu.matmul %64, %1, %cst_57 {dimension_numbers = #tpu.dot_dimension_numbers<[1], [0], [0], [1], [0, 0, 1, 1], [], []>} : vector<32x32xf32>, vector<32x64xf32>, vector<32x64xf32> -> vector<32x64xf32>
    %66 = arith.addf %62, %65 : vector<32x64xf32>
    %c0_58 = arith.constant 0 : index
    %c0_59 = arith.constant 0 : index
    %c0_60 = arith.constant 0 : index
    %67 = vector.load %arg18[%c0_58, %c0_59, %c0_60] : memref<1x32x1xf32, #tpu.memory_space<vmem>>, vector<1x32x1xf32>
    %68 = vector.shape_cast %67 : vector<1x32x1xf32> to vector<32x1xf32>
    %69 = vector.broadcast %68 : vector<32x1xf32> to vector<32x64xf32>
    %70 = arith.mulf %66, %69 : vector<32x64xf32>
    %c0_61 = arith.constant 0 : index
    %c0_62 = arith.constant 0 : index
    %c0_63 = arith.constant 0 : index
    %71 = vector.load %arg19[%c0_61, %c0_62, %c0_63] : memref<1x32x1xf32, #tpu.memory_space<vmem>>, vector<1x32x1xf32>
    %72 = vector.shape_cast %71 : vector<1x32x1xf32> to vector<32x1xf32>
    %73 = vector.broadcast %72 : vector<32x1xf32> to vector<32x64xf32>
    %74 = arith.addf %70, %73 : vector<32x64xf32>
    %cst_64 = arith.constant 0.000000e+00 : f32
    %75 = vector.broadcast %cst_64 : f32 to vector<32x64xf32>
    %76 = arith.maximumf %74, %75 : vector<32x64xf32>
    %c0_65 = arith.constant 0 : index
    %c0_66 = arith.constant 0 : index
    %c0_67 = arith.constant 0 : index
    %77 = vector.load %arg20[%c0_65, %c0_66, %c0_67] : memref<1x16x32xf32, #tpu.memory_space<vmem>>, vector<1x16x32xf32>
    %78 = vector.shape_cast %77 : vector<1x16x32xf32> to vector<16x32xf32>
    %cst_68 = arith.constant dense<0.000000e+00> : vector<16x64xf32>
    %79 = tpu.matmul %78, %76, %cst_68 {dimension_numbers = #tpu.dot_dimension_numbers<[1], [0], [0], [1], [0, 0, 1, 1], [], []>} : vector<16x32xf32>, vector<32x64xf32>, vector<16x64xf32> -> vector<16x64xf32>
    %c0_69 = arith.constant 0 : index
    %c0_70 = arith.constant 0 : index
    %c0_71 = arith.constant 0 : index
    %80 = vector.load %arg21[%c0_69, %c0_70, %c0_71] : memref<1x16x1xf32, #tpu.memory_space<vmem>>, vector<1x16x1xf32>
    %81 = vector.shape_cast %80 : vector<1x16x1xf32> to vector<16x1xf32>
    %82 = vector.broadcast %81 : vector<16x1xf32> to vector<16x64xf32>
    %83 = arith.mulf %79, %82 : vector<16x64xf32>
    %c0_72 = arith.constant 0 : index
    %c0_73 = arith.constant 0 : index
    %c0_74 = arith.constant 0 : index
    %84 = vector.load %arg22[%c0_72, %c0_73, %c0_74] : memref<1x16x1xf32, #tpu.memory_space<vmem>>, vector<1x16x1xf32>
    %85 = vector.shape_cast %84 : vector<1x16x1xf32> to vector<16x1xf32>
    %86 = vector.broadcast %85 : vector<16x1xf32> to vector<16x64xf32>
    %87 = arith.addf %83, %86 : vector<16x64xf32>
    %cst_75 = arith.constant 0.000000e+00 : f32
    %88 = vector.broadcast %cst_75 : f32 to vector<16x64xf32>
    %89 = arith.maximumf %87, %88 : vector<16x64xf32>
    %c0_76 = arith.constant 0 : index
    %c0_77 = arith.constant 0 : index
    %c0_78 = arith.constant 0 : index
    %c0_79 = arith.constant 0 : index
    %90 = vector.load %arg27[%c0_76, %c0_77, %c0_78, %c0_79] : memref<1x1x16x64xf32, #tpu.memory_space<vmem>>, vector<1x1x16x64xf32>
    %91 = vector.shape_cast %90 : vector<1x1x16x64xf32> to vector<16x64xf32>
    %92 = vector.shape_cast %89 : vector<16x64xf32> to vector<1x1x16x64xf32>
    tpu.vector_store %arg27[%c0_76, %c0_77, %c0_78, %c0_79], %92 {strides = array<i32>} : memref<1x1x16x64xf32, #tpu.memory_space<vmem>>, vector<1x1x16x64xf32>,
    %93 = vector.extract_strided_slice %89 {offsets = [8, 0], sizes = [8, 64], strides = [1, 1]} : vector<16x64xf32> to vector<8x64xf32>
    %c0_80 = arith.constant 0 : index
    %c0_81 = arith.constant 0 : index
    %c0_82 = arith.constant 0 : index
    %94 = vector.load %arg23[%c0_80, %c0_81, %c0_82] : memref<1x3x8xf32, #tpu.memory_space<vmem>>, vector<1x3x8xf32>
    %95 = vector.shape_cast %94 : vector<1x3x8xf32> to vector<3x8xf32>
    %cst_83 = arith.constant dense<0.000000e+00> : vector<3x64xf32>
    %96 = tpu.matmul %95, %93, %cst_83 {dimension_numbers = #tpu.dot_dimension_numbers<[1], [0], [0], [1], [0, 0, 1, 1], [], []>} : vector<3x8xf32>, vector<8x64xf32>, vector<3x64xf32> -> vector<3x64xf32>
    %c0_84 = arith.constant 0 : index
    %c0_85 = arith.constant 0 : index
    %c0_86 = arith.constant 0 : index
    %97 = vector.load %arg24[%c0_84, %c0_85, %c0_86] : memref<1x3x1xf32, #tpu.memory_space<vmem>>, vector<1x3x1xf32>
    %98 = vector.shape_cast %97 : vector<1x3x1xf32> to vector<3x1xf32>
    %99 = vector.broadcast %98 : vector<3x1xf32> to vector<3x64xf32>
    %100 = arith.addf %96, %99 : vector<3x64xf32>
    %c0_87 = arith.constant 0 : index
    %c0_88 = arith.constant 0 : index
    %c0_89 = arith.constant 0 : index
    %c0_90 = arith.constant 0 : index
    %101 = vector.load %arg28[%c0_87, %c0_88, %c0_89, %c0_90] : memref<1x1x3x64xf32, #tpu.memory_space<vmem>>, vector<1x1x3x64xf32>
    %102 = vector.shape_cast %101 : vector<1x1x3x64xf32> to vector<3x64xf32>
    %103 = vector.shape_cast %100 : vector<3x64xf32> to vector<1x1x3x64xf32>
    tpu.vector_store %arg28[%c0_87, %c0_88, %c0_89, %c0_90], %103 {strides = array<i32>} : memref<1x1x3x64xf32, #tpu.memory_space<vmem>>, vector<1x1x3x64xf32>,
    %c0_91 = arith.constant 0 : index
    %c0_92 = arith.constant 0 : index
    %c0_93 = arith.constant 0 : index
    %104 = vector.load %arg25[%c0_91, %c0_92, %c0_93] : memref<1x2x16xf32, #tpu.memory_space<vmem>>, vector<1x2x16xf32>
    %105 = vector.shape_cast %104 : vector<1x2x16xf32> to vector<2x16xf32>
    %cst_94 = arith.constant dense<0.000000e+00> : vector<2x64xf32>
    %106 = tpu.matmul %105, %89, %cst_94 {dimension_numbers = #tpu.dot_dimension_numbers<[1], [0], [0], [1], [0, 0, 1, 1], [], []>} : vector<2x16xf32>, vector<16x64xf32>, vector<2x64xf32> -> vector<2x64xf32>
    %c0_95 = arith.constant 0 : index
    %c0_96 = arith.constant 0 : index
    %c0_97 = arith.constant 0 : index
    %107 = vector.load %arg26[%c0_95, %c0_96, %c0_97] : memref<1x2x1xf32, #tpu.memory_space<vmem>>, vector<1x2x1xf32>
    %108 = vector.shape_cast %107 : vector<1x2x1xf32> to vector<2x1xf32>
    %109 = vector.broadcast %108 : vector<2x1xf32> to vector<2x64xf32>
    %110 = arith.addf %106, %109 : vector<2x64xf32>
    %c0_98 = arith.constant 0 : index
    %c0_99 = arith.constant 0 : index
    %c0_100 = arith.constant 0 : index
    %c0_101 = arith.constant 0 : index
    %111 = vector.load %arg29[%c0_98, %c0_99, %c0_100, %c0_101] : memref<1x1x2x64xf32, #tpu.memory_space<vmem>>, vector<1x1x2x64xf32>
    %112 = vector.shape_cast %111 : vector<1x1x2x64xf32> to vector<2x64xf32>
    %113 = vector.shape_cast %110 : vector<2x64xf32> to vector<1x1x2x64xf32>
    tpu.vector_store %arg29[%c0_98, %c0_99, %c0_100, %c0_101], %113 {strides = array<i32>} : memref<1x1x2x64xf32, #tpu.memory_space<vmem>>, vector<1x1x2x64xf32>,
    return
  }
  func.func @transform_0(%arg0: i32, %arg1: i32) -> (i32, i32, i32) {
    %c0_i32 = arith.constant 0 : i32
    %c0_i32_0 = arith.constant 0 : i32
    %c0_i32_1 = arith.constant 0 : i32
    return %arg1, %c0_i32, %c0_i32_0 : i32, i32, i32
  }
  func.func @transform_1(%arg0: i32, %arg1: i32) -> (i32, i32) {
    %c0_i32 = arith.constant 0 : i32
    %c0_i32_0 = arith.constant 0 : i32
    %c0_i32_1 = arith.constant 0 : i32
    return %c0_i32, %c0_i32_0 : i32, i32
  }
  func.func @transform_2(%arg0: i32, %arg1: i32) -> (i32, i32) {
    %c0_i32 = arith.constant 0 : i32
    %c0_i32_0 = arith.constant 0 : i32
    %c0_i32_1 = arith.constant 0 : i32
    return %c0_i32, %c0_i32_0 : i32, i32
  }
  func.func @transform_3(%arg0: i32, %arg1: i32) -> (i32, i32, i32, i32) {
    %c0_i32 = arith.constant 0 : i32
    %c0_i32_0 = arith.constant 0 : i32
    %c0_i32_1 = arith.constant 0 : i32
    return %arg0, %arg1, %c0_i32, %c0_i32_0 : i32, i32, i32, i32
  }
  func.func @transform_4(%arg0: i32, %arg1: i32) -> (i32, i32, i32) {
    %c0_i32 = arith.constant 0 : i32
    %c0_i32_0 = arith.constant 0 : i32
    %c0_i32_1 = arith.constant 0 : i32
    return %arg0, %c0_i32, %c0_i32_0 : i32, i32, i32
  }
  func.func @transform_5(%arg0: i32, %arg1: i32) -> (i32, i32, i32) {
    %c0_i32 = arith.constant 0 : i32
    %c0_i32_0 = arith.constant 0 : i32
    %c0_i32_1 = arith.constant 0 : i32
    return %arg0, %c0_i32, %c0_i32_0 : i32, i32, i32
  }
  func.func @transform_6(%arg0: i32, %arg1: i32) -> (i32, i32, i32) {
    %c0_i32 = arith.constant 0 : i32
    %c0_i32_0 = arith.constant 0 : i32
    %c0_i32_1 = arith.constant 0 : i32
    return %arg0, %c0_i32, %c0_i32_0 : i32, i32, i32
  }
  func.func @transform_7(%arg0: i32, %arg1: i32) -> (i32, i32, i32) {
    %c0_i32 = arith.constant 0 : i32
    %c0_i32_0 = arith.constant 0 : i32
    %c0_i32_1 = arith.constant 0 : i32
    return %arg0, %c0_i32, %c0_i32_0 : i32, i32, i32
  }
  func.func @transform_8(%arg0: i32, %arg1: i32) -> (i32, i32, i32) {
    %c0_i32 = arith.constant 0 : i32
    %c0_i32_0 = arith.constant 0 : i32
    %c0_i32_1 = arith.constant 0 : i32
    return %arg0, %c0_i32, %c0_i32_0 : i32, i32, i32
  }
  func.func @transform_9(%arg0: i32, %arg1: i32) -> (i32, i32, i32) {
    %c0_i32 = arith.constant 0 : i32
    %c0_i32_0 = arith.constant 0 : i32
    %c0_i32_1 = arith.constant 0 : i32
    return %arg0, %c0_i32, %c0_i32_0 : i32, i32, i32
  }
  func.func @transform_10(%arg0: i32, %arg1: i32) -> (i32, i32, i32) {
    %c0_i32 = arith.constant 0 : i32
    %c0_i32_0 = arith.constant 0 : i32
    %c0_i32_1 = arith.constant 0 : i32
    return %arg0, %c0_i32, %c0_i32_0 : i32, i32, i32
  }
  func.func @transform_11(%arg0: i32, %arg1: i32) -> (i32, i32, i32) {
    %c0_i32 = arith.constant 0 : i32
    %c0_i32_0 = arith.constant 0 : i32
    %c0_i32_1 = arith.constant 0 : i32
    return %arg0, %c0_i32, %c0_i32_0 : i32, i32, i32
  }
  func.func @transform_12(%arg0: i32, %arg1: i32) -> (i32, i32, i32) {
    %c0_i32 = arith.constant 0 : i32
    %c0_i32_0 = arith.constant 0 : i32
    %c0_i32_1 = arith.constant 0 : i32
    return %arg0, %c0_i32, %c0_i32_0 : i32, i32, i32
  }
  func.func @transform_13(%arg0: i32, %arg1: i32) -> (i32, i32, i32) {
    %c0_i32 = arith.constant 0 : i32
    %c0_i32_0 = arith.constant 0 : i32
    %c0_i32_1 = arith.constant 0 : i32
    return %arg0, %c0_i32, %c0_i32_0 : i32, i32, i32
  }
  func.func @transform_14(%arg0: i32, %arg1: i32) -> (i32, i32, i32) {
    %c0_i32 = arith.constant 0 : i32
    %c0_i32_0 = arith.constant 0 : i32
    %c0_i32_1 = arith.constant 0 : i32
    return %arg0, %c0_i32, %c0_i32_0 : i32, i32, i32
  }
  func.func @transform_15(%arg0: i32, %arg1: i32) -> (i32, i32, i32) {
    %c0_i32 = arith.constant 0 : i32
    %c0_i32_0 = arith.constant 0 : i32
    %c0_i32_1 = arith.constant 0 : i32
    return %arg0, %c0_i32, %c0_i32_0 : i32, i32, i32
  }
  func.func @transform_16(%arg0: i32, %arg1: i32) -> (i32, i32, i32) {
    %c0_i32 = arith.constant 0 : i32
    %c0_i32_0 = arith.constant 0 : i32
    %c0_i32_1 = arith.constant 0 : i32
    return %arg0, %c0_i32, %c0_i32_0 : i32, i32, i32
  }
  func.func @transform_17(%arg0: i32, %arg1: i32) -> (i32, i32, i32) {
    %c0_i32 = arith.constant 0 : i32
    %c0_i32_0 = arith.constant 0 : i32
    %c0_i32_1 = arith.constant 0 : i32
    return %arg0, %c0_i32, %c0_i32_0 : i32, i32, i32
  }
  func.func @transform_18(%arg0: i32, %arg1: i32) -> (i32, i32, i32) {
    %c0_i32 = arith.constant 0 : i32
    %c0_i32_0 = arith.constant 0 : i32
    %c0_i32_1 = arith.constant 0 : i32
    return %arg0, %c0_i32, %c0_i32_0 : i32, i32, i32
  }
  func.func @transform_19(%arg0: i32, %arg1: i32) -> (i32, i32, i32) {
    %c0_i32 = arith.constant 0 : i32
    %c0_i32_0 = arith.constant 0 : i32
    %c0_i32_1 = arith.constant 0 : i32
    return %arg0, %c0_i32, %c0_i32_0 : i32, i32, i32
  }
  func.func @transform_20(%arg0: i32, %arg1: i32) -> (i32, i32, i32) {
    %c0_i32 = arith.constant 0 : i32
    %c0_i32_0 = arith.constant 0 : i32
    %c0_i32_1 = arith.constant 0 : i32
    return %arg0, %c0_i32, %c0_i32_0 : i32, i32, i32
  }
  func.func @transform_21(%arg0: i32, %arg1: i32) -> (i32, i32, i32) {
    %c0_i32 = arith.constant 0 : i32
    %c0_i32_0 = arith.constant 0 : i32
    %c0_i32_1 = arith.constant 0 : i32
    return %arg0, %c0_i32, %c0_i32_0 : i32, i32, i32
  }
  func.func @transform_22(%arg0: i32, %arg1: i32) -> (i32, i32, i32) {
    %c0_i32 = arith.constant 0 : i32
    %c0_i32_0 = arith.constant 0 : i32
    %c0_i32_1 = arith.constant 0 : i32
    return %arg0, %c0_i32, %c0_i32_0 : i32, i32, i32
  }
  func.func @transform_23(%arg0: i32, %arg1: i32) -> (i32, i32, i32) {
    %c0_i32 = arith.constant 0 : i32
    %c0_i32_0 = arith.constant 0 : i32
    %c0_i32_1 = arith.constant 0 : i32
    return %arg0, %c0_i32, %c0_i32_0 : i32, i32, i32
  }
  func.func @transform_24(%arg0: i32, %arg1: i32) -> (i32, i32, i32) {
    %c0_i32 = arith.constant 0 : i32
    %c0_i32_0 = arith.constant 0 : i32
    %c0_i32_1 = arith.constant 0 : i32
    return %arg0, %c0_i32, %c0_i32_0 : i32, i32, i32
  }
  func.func @transform_25(%arg0: i32, %arg1: i32) -> (i32, i32, i32, i32) {
    %c0_i32 = arith.constant 0 : i32
    %c0_i32_0 = arith.constant 0 : i32
    %c0_i32_1 = arith.constant 0 : i32
    return %arg0, %arg1, %c0_i32, %c0_i32_0 : i32, i32, i32, i32
  }
  func.func @transform_26(%arg0: i32, %arg1: i32) -> (i32, i32, i32, i32) {
    %c0_i32 = arith.constant 0 : i32
    %c0_i32_0 = arith.constant 0 : i32
    %c0_i32_1 = arith.constant 0 : i32
    return %arg0, %arg1, %c0_i32, %c0_i32_0 : i32, i32, i32, i32
  }
  func.func @transform_27(%arg0: i32, %arg1: i32) -> (i32, i32, i32, i32) {
    %c0_i32 = arith.constant 0 : i32
    %c0_i32_0 = arith.constant 0 : i32
    %c0_i32_1 = arith.constant 0 : i32
    return %arg0, %arg1, %c0_i32, %c0_i32_0 : i32, i32, i32, i32
  }
}

module attributes {stable_mosaic.version = 11 : i64} {
  func.func @_block2_kernel(%arg0: i32, %arg1: memref<1x8x128xf32, #tpu.memory_space<vmem>>, %arg2: memref<1x8x128xf32, #tpu.memory_space<vmem>>, %arg3: memref<1x16x8xf32, #tpu.memory_space<vmem>>, %arg4: memref<1x16x8xf32, #tpu.memory_space<vmem>>, %arg5: memref<1x16x1xf32, #tpu.memory_space<vmem>>, %arg6: memref<1x16x1xf32, #tpu.memory_space<vmem>>, %arg7: memref<1x8x16xf32, #tpu.memory_space<vmem>>, %arg8: memref<1x8x1xf32, #tpu.memory_space<vmem>>, %arg9: memref<1x8x1xf32, #tpu.memory_space<vmem>>, %arg10: memref<1x8x128xf32, #tpu.memory_space<vmem>>) attributes {dimension_semantics = [#tpu.dimension_semantics<parallel>], iteration_bounds = array<i64: 16>, scalar_prefetch = 0 : i64, scratch_operands = 0 : i64, tpu.core_type = #tpu.core_type<tc>, window_params = [{transform_indices = @transform_0, window_bounds = array<i64: 1, 8, 128>}, {transform_indices = @transform_1, window_bounds = array<i64: 1, 8, 128>}, {transform_indices = @transform_2, window_bounds = array<i64: 1, 16, 8>}, {transform_indices = @transform_3, window_bounds = array<i64: 1, 16, 8>}, {transform_indices = @transform_4, window_bounds = array<i64: 1, 16, 1>}, {transform_indices = @transform_5, window_bounds = array<i64: 1, 16, 1>}, {transform_indices = @transform_6, window_bounds = array<i64: 1, 8, 16>}, {transform_indices = @transform_7, window_bounds = array<i64: 1, 8, 1>}, {transform_indices = @transform_8, window_bounds = array<i64: 1, 8, 1>}, {transform_indices = @transform_9, window_bounds = array<i64: 1, 8, 128>}]} {
    %c0 = arith.constant 0 : index
    %c0_0 = arith.constant 0 : index
    %c0_1 = arith.constant 0 : index
    %0 = vector.load %arg1[%c0, %c0_0, %c0_1] : memref<1x8x128xf32, #tpu.memory_space<vmem>>, vector<1x8x128xf32>
    %1 = vector.shape_cast %0 : vector<1x8x128xf32> to vector<8x128xf32>
    %c0_2 = arith.constant 0 : index
    %c0_3 = arith.constant 0 : index
    %c0_4 = arith.constant 0 : index
    %2 = vector.load %arg2[%c0_2, %c0_3, %c0_4] : memref<1x8x128xf32, #tpu.memory_space<vmem>>, vector<1x8x128xf32>
    %3 = vector.shape_cast %2 : vector<1x8x128xf32> to vector<8x128xf32>
    %c0_5 = arith.constant 0 : index
    %c0_6 = arith.constant 0 : index
    %c0_7 = arith.constant 0 : index
    %4 = vector.load %arg3[%c0_5, %c0_6, %c0_7] : memref<1x16x8xf32, #tpu.memory_space<vmem>>, vector<1x16x8xf32>
    %5 = vector.shape_cast %4 : vector<1x16x8xf32> to vector<16x8xf32>
    %cst = arith.constant dense<0.000000e+00> : vector<16x128xf32>
    %6 = tpu.matmul %5, %1, %cst {dimension_numbers = #tpu.dot_dimension_numbers<[1], [0], [0], [1], [0, 0, 1, 1], [], []>} : vector<16x8xf32>, vector<8x128xf32>, vector<16x128xf32> -> vector<16x128xf32>
    %c0_8 = arith.constant 0 : index
    %c0_9 = arith.constant 0 : index
    %c0_10 = arith.constant 0 : index
    %7 = vector.load %arg4[%c0_8, %c0_9, %c0_10] : memref<1x16x8xf32, #tpu.memory_space<vmem>>, vector<1x16x8xf32>
    %8 = vector.shape_cast %7 : vector<1x16x8xf32> to vector<16x8xf32>
    %cst_11 = arith.constant dense<0.000000e+00> : vector<16x128xf32>
    %9 = tpu.matmul %8, %3, %cst_11 {dimension_numbers = #tpu.dot_dimension_numbers<[1], [0], [0], [1], [0, 0, 1, 1], [], []>} : vector<16x8xf32>, vector<8x128xf32>, vector<16x128xf32> -> vector<16x128xf32>
    %10 = arith.addf %6, %9 : vector<16x128xf32>
    %c0_12 = arith.constant 0 : index
    %c0_13 = arith.constant 0 : index
    %c0_14 = arith.constant 0 : index
    %11 = vector.load %arg5[%c0_12, %c0_13, %c0_14] : memref<1x16x1xf32, #tpu.memory_space<vmem>>, vector<1x16x1xf32>
    %12 = vector.shape_cast %11 : vector<1x16x1xf32> to vector<16x1xf32>
    %13 = vector.broadcast %12 : vector<16x1xf32> to vector<16x128xf32>
    %14 = arith.mulf %10, %13 : vector<16x128xf32>
    %c0_15 = arith.constant 0 : index
    %c0_16 = arith.constant 0 : index
    %c0_17 = arith.constant 0 : index
    %15 = vector.load %arg6[%c0_15, %c0_16, %c0_17] : memref<1x16x1xf32, #tpu.memory_space<vmem>>, vector<1x16x1xf32>
    %16 = vector.shape_cast %15 : vector<1x16x1xf32> to vector<16x1xf32>
    %17 = vector.broadcast %16 : vector<16x1xf32> to vector<16x128xf32>
    %18 = arith.addf %14, %17 : vector<16x128xf32>
    %cst_18 = arith.constant 0.000000e+00 : f32
    %19 = vector.broadcast %cst_18 : f32 to vector<16x128xf32>
    %20 = arith.maximumf %18, %19 : vector<16x128xf32>
    %c0_19 = arith.constant 0 : index
    %c0_20 = arith.constant 0 : index
    %c0_21 = arith.constant 0 : index
    %21 = vector.load %arg7[%c0_19, %c0_20, %c0_21] : memref<1x8x16xf32, #tpu.memory_space<vmem>>, vector<1x8x16xf32>
    %22 = vector.shape_cast %21 : vector<1x8x16xf32> to vector<8x16xf32>
    %cst_22 = arith.constant dense<0.000000e+00> : vector<8x128xf32>
    %23 = tpu.matmul %22, %20, %cst_22 {dimension_numbers = #tpu.dot_dimension_numbers<[1], [0], [0], [1], [0, 0, 1, 1], [], []>} : vector<8x16xf32>, vector<16x128xf32>, vector<8x128xf32> -> vector<8x128xf32>
    %c0_23 = arith.constant 0 : index
    %c0_24 = arith.constant 0 : index
    %c0_25 = arith.constant 0 : index
    %24 = vector.load %arg8[%c0_23, %c0_24, %c0_25] : memref<1x8x1xf32, #tpu.memory_space<vmem>>, vector<1x8x1xf32>
    %25 = vector.shape_cast %24 : vector<1x8x1xf32> to vector<8x1xf32>
    %26 = vector.broadcast %25 : vector<8x1xf32> to vector<8x128xf32>
    %27 = arith.mulf %23, %26 : vector<8x128xf32>
    %c0_26 = arith.constant 0 : index
    %c0_27 = arith.constant 0 : index
    %c0_28 = arith.constant 0 : index
    %28 = vector.load %arg9[%c0_26, %c0_27, %c0_28] : memref<1x8x1xf32, #tpu.memory_space<vmem>>, vector<1x8x1xf32>
    %29 = vector.shape_cast %28 : vector<1x8x1xf32> to vector<8x1xf32>
    %30 = vector.broadcast %29 : vector<8x1xf32> to vector<8x128xf32>
    %31 = arith.addf %27, %30 : vector<8x128xf32>
    %cst_29 = arith.constant 0.000000e+00 : f32
    %32 = vector.broadcast %cst_29 : f32 to vector<8x128xf32>
    %33 = arith.maximumf %31, %32 : vector<8x128xf32>
    %c0_30 = arith.constant 0 : index
    %c0_31 = arith.constant 0 : index
    %c0_32 = arith.constant 0 : index
    %34 = vector.load %arg10[%c0_30, %c0_31, %c0_32] : memref<1x8x128xf32, #tpu.memory_space<vmem>>, vector<1x8x128xf32>
    %35 = vector.shape_cast %34 : vector<1x8x128xf32> to vector<8x128xf32>
    %36 = vector.shape_cast %33 : vector<8x128xf32> to vector<1x8x128xf32>
    tpu.vector_store %arg10[%c0_30, %c0_31, %c0_32], %36 {strides = array<i32>} : memref<1x8x128xf32, #tpu.memory_space<vmem>>, vector<1x8x128xf32>,
    return
  }
  func.func @transform_0(%arg0: i32) -> (i32, i32, i32) {
    %c0_i32 = arith.constant 0 : i32
    %c0_i32_0 = arith.constant 0 : i32
    %c0_i32_1 = arith.constant 0 : i32
    return %arg0, %c0_i32, %c0_i32_0 : i32, i32, i32
  }
  func.func @transform_1(%arg0: i32) -> (i32, i32, i32) {
    %c0_i32 = arith.constant 0 : i32
    %c0_i32_0 = arith.constant 0 : i32
    %c0_i32_1 = arith.constant 0 : i32
    return %arg0, %c0_i32, %c0_i32_0 : i32, i32, i32
  }
  func.func @transform_2(%arg0: i32) -> (i32, i32, i32) {
    %c0_i32 = arith.constant 0 : i32
    %c0_i32_0 = arith.constant 0 : i32
    %c0_i32_1 = arith.constant 0 : i32
    return %arg0, %c0_i32, %c0_i32_0 : i32, i32, i32
  }
  func.func @transform_3(%arg0: i32) -> (i32, i32, i32) {
    %c0_i32 = arith.constant 0 : i32
    %c0_i32_0 = arith.constant 0 : i32
    %c0_i32_1 = arith.constant 0 : i32
    return %arg0, %c0_i32, %c0_i32_0 : i32, i32, i32
  }
  func.func @transform_4(%arg0: i32) -> (i32, i32, i32) {
    %c0_i32 = arith.constant 0 : i32
    %c0_i32_0 = arith.constant 0 : i32
    %c0_i32_1 = arith.constant 0 : i32
    return %arg0, %c0_i32, %c0_i32_0 : i32, i32, i32
  }
  func.func @transform_5(%arg0: i32) -> (i32, i32, i32) {
    %c0_i32 = arith.constant 0 : i32
    %c0_i32_0 = arith.constant 0 : i32
    %c0_i32_1 = arith.constant 0 : i32
    return %arg0, %c0_i32, %c0_i32_0 : i32, i32, i32
  }
  func.func @transform_6(%arg0: i32) -> (i32, i32, i32) {
    %c0_i32 = arith.constant 0 : i32
    %c0_i32_0 = arith.constant 0 : i32
    %c0_i32_1 = arith.constant 0 : i32
    return %arg0, %c0_i32, %c0_i32_0 : i32, i32, i32
  }
  func.func @transform_7(%arg0: i32) -> (i32, i32, i32) {
    %c0_i32 = arith.constant 0 : i32
    %c0_i32_0 = arith.constant 0 : i32
    %c0_i32_1 = arith.constant 0 : i32
    return %arg0, %c0_i32, %c0_i32_0 : i32, i32, i32
  }
  func.func @transform_8(%arg0: i32) -> (i32, i32, i32) {
    %c0_i32 = arith.constant 0 : i32
    %c0_i32_0 = arith.constant 0 : i32
    %c0_i32_1 = arith.constant 0 : i32
    return %arg0, %c0_i32, %c0_i32_0 : i32, i32, i32
  }
  func.func @transform_9(%arg0: i32) -> (i32, i32, i32) {
    %c0_i32 = arith.constant 0 : i32
    %c0_i32_0 = arith.constant 0 : i32
    %c0_i32_1 = arith.constant 0 : i32
    return %arg0, %c0_i32, %c0_i32_0 : i32, i32, i32
  }
}

module attributes {stable_mosaic.version = 11 : i64} {
  func.func @_convgru_kernel(%arg0: i32, %arg1: memref<1x8x128xf32, #tpu.memory_space<vmem>>, %arg2: memref<1x8x128xf32, #tpu.memory_space<vmem>>, %arg3: memref<1x24x8xf32, #tpu.memory_space<vmem>>, %arg4: memref<1x16x8xf32, #tpu.memory_space<vmem>>, %arg5: memref<1x8x8xf32, #tpu.memory_space<vmem>>, %arg6: memref<1x16x1xf32, #tpu.memory_space<vmem>>, %arg7: memref<1x8x1xf32, #tpu.memory_space<vmem>>, %arg8: memref<1x8x128xf32, #tpu.memory_space<vmem>>) attributes {dimension_semantics = [#tpu.dimension_semantics<parallel>], iteration_bounds = array<i64: 6>, scalar_prefetch = 0 : i64, scratch_operands = 0 : i64, tpu.core_type = #tpu.core_type<tc>, window_params = [{transform_indices = @transform_0, window_bounds = array<i64: 1, 8, 128>}, {transform_indices = @transform_1, window_bounds = array<i64: 1, 8, 128>}, {transform_indices = @transform_2, window_bounds = array<i64: 1, 24, 8>}, {transform_indices = @transform_3, window_bounds = array<i64: 1, 16, 8>}, {transform_indices = @transform_4, window_bounds = array<i64: 1, 8, 8>}, {transform_indices = @transform_5, window_bounds = array<i64: 1, 16, 1>}, {transform_indices = @transform_6, window_bounds = array<i64: 1, 8, 1>}, {transform_indices = @transform_7, window_bounds = array<i64: 1, 8, 128>}]} {
    %c0 = arith.constant 0 : index
    %c0_0 = arith.constant 0 : index
    %c0_1 = arith.constant 0 : index
    %0 = vector.load %arg1[%c0, %c0_0, %c0_1] : memref<1x8x128xf32, #tpu.memory_space<vmem>>, vector<1x8x128xf32>
    %1 = vector.shape_cast %0 : vector<1x8x128xf32> to vector<8x128xf32>
    %c0_2 = arith.constant 0 : index
    %c0_3 = arith.constant 0 : index
    %c0_4 = arith.constant 0 : index
    %2 = vector.load %arg2[%c0_2, %c0_3, %c0_4] : memref<1x8x128xf32, #tpu.memory_space<vmem>>, vector<1x8x128xf32>
    %3 = vector.shape_cast %2 : vector<1x8x128xf32> to vector<8x128xf32>
    %c0_5 = arith.constant 0 : index
    %c0_6 = arith.constant 0 : index
    %c0_7 = arith.constant 0 : index
    %4 = vector.load %arg3[%c0_5, %c0_6, %c0_7] : memref<1x24x8xf32, #tpu.memory_space<vmem>>, vector<1x24x8xf32>
    %5 = vector.shape_cast %4 : vector<1x24x8xf32> to vector<24x8xf32>
    %cst = arith.constant dense<0.000000e+00> : vector<24x128xf32>
    %6 = tpu.matmul %5, %1, %cst {dimension_numbers = #tpu.dot_dimension_numbers<[1], [0], [0], [1], [0, 0, 1, 1], [], []>} : vector<24x8xf32>, vector<8x128xf32>, vector<24x128xf32> -> vector<24x128xf32>
    %c0_8 = arith.constant 0 : index
    %c0_9 = arith.constant 0 : index
    %c0_10 = arith.constant 0 : index
    %7 = vector.load %arg4[%c0_8, %c0_9, %c0_10] : memref<1x16x8xf32, #tpu.memory_space<vmem>>, vector<1x16x8xf32>
    %8 = vector.shape_cast %7 : vector<1x16x8xf32> to vector<16x8xf32>
    %cst_11 = arith.constant dense<0.000000e+00> : vector<16x128xf32>
    %9 = tpu.matmul %8, %3, %cst_11 {dimension_numbers = #tpu.dot_dimension_numbers<[1], [0], [0], [1], [0, 0, 1, 1], [], []>} : vector<16x8xf32>, vector<8x128xf32>, vector<16x128xf32> -> vector<16x128xf32>
    %10 = vector.extract_strided_slice %6 {offsets = [0, 0], sizes = [16, 128], strides = [1, 1]} : vector<24x128xf32> to vector<16x128xf32>
    %11 = arith.addf %10, %9 : vector<16x128xf32>
    %c0_12 = arith.constant 0 : index
    %c0_13 = arith.constant 0 : index
    %c0_14 = arith.constant 0 : index
    %12 = vector.load %arg6[%c0_12, %c0_13, %c0_14] : memref<1x16x1xf32, #tpu.memory_space<vmem>>, vector<1x16x1xf32>
    %13 = vector.shape_cast %12 : vector<1x16x1xf32> to vector<16x1xf32>
    %14 = vector.broadcast %13 : vector<16x1xf32> to vector<16x128xf32>
    %15 = arith.addf %11, %14 : vector<16x128xf32>
    %16 = arith.negf %15 : vector<16x128xf32>
    %17 = math.exp %16 : vector<16x128xf32>
    %cst_15 = arith.constant 1.000000e+00 : f32
    %18 = vector.broadcast %cst_15 : f32 to vector<16x128xf32>
    %19 = arith.addf %18, %17 : vector<16x128xf32>
    %20 = arith.divf %18, %19 : vector<16x128xf32>
    %21 = vector.extract_strided_slice %20 {offsets = [0, 0], sizes = [8, 128], strides = [1, 1]} : vector<16x128xf32> to vector<8x128xf32>
    %22 = vector.extract_strided_slice %20 {offsets = [8, 0], sizes = [8, 128], strides = [1, 1]} : vector<16x128xf32> to vector<8x128xf32>
    %23 = vector.extract_strided_slice %6 {offsets = [16, 0], sizes = [8, 128], strides = [1, 1]} : vector<24x128xf32> to vector<8x128xf32>
    %c0_16 = arith.constant 0 : index
    %c0_17 = arith.constant 0 : index
    %c0_18 = arith.constant 0 : index
    %24 = vector.load %arg5[%c0_16, %c0_17, %c0_18] : memref<1x8x8xf32, #tpu.memory_space<vmem>>, vector<1x8x8xf32>
    %25 = vector.shape_cast %24 : vector<1x8x8xf32> to vector<8x8xf32>
    %26 = arith.mulf %21, %3 : vector<8x128xf32>
    %cst_19 = arith.constant dense<0.000000e+00> : vector<8x128xf32>
    %27 = tpu.matmul %25, %26, %cst_19 {dimension_numbers = #tpu.dot_dimension_numbers<[1], [0], [0], [1], [0, 0, 1, 1], [], []>} : vector<8x8xf32>, vector<8x128xf32>, vector<8x128xf32> -> vector<8x128xf32>
    %28 = arith.addf %23, %27 : vector<8x128xf32>
    %c0_20 = arith.constant 0 : index
    %c0_21 = arith.constant 0 : index
    %c0_22 = arith.constant 0 : index
    %29 = vector.load %arg7[%c0_20, %c0_21, %c0_22] : memref<1x8x1xf32, #tpu.memory_space<vmem>>, vector<1x8x1xf32>
    %30 = vector.shape_cast %29 : vector<1x8x1xf32> to vector<8x1xf32>
    %31 = vector.broadcast %30 : vector<8x1xf32> to vector<8x128xf32>
    %32 = arith.addf %28, %31 : vector<8x128xf32>
    %33 = math.tanh %32 : vector<8x128xf32>
    %cst_23 = arith.constant 1.000000e+00 : f32
    %34 = vector.broadcast %cst_23 : f32 to vector<8x128xf32>
    %35 = arith.subf %34, %22 : vector<8x128xf32>
    %36 = arith.mulf %35, %3 : vector<8x128xf32>
    %37 = arith.mulf %22, %33 : vector<8x128xf32>
    %38 = arith.addf %36, %37 : vector<8x128xf32>
    %c0_24 = arith.constant 0 : index
    %c0_25 = arith.constant 0 : index
    %c0_26 = arith.constant 0 : index
    %39 = vector.load %arg8[%c0_24, %c0_25, %c0_26] : memref<1x8x128xf32, #tpu.memory_space<vmem>>, vector<1x8x128xf32>
    %40 = vector.shape_cast %39 : vector<1x8x128xf32> to vector<8x128xf32>
    %41 = vector.shape_cast %38 : vector<8x128xf32> to vector<1x8x128xf32>
    tpu.vector_store %arg8[%c0_24, %c0_25, %c0_26], %41 {strides = array<i32>} : memref<1x8x128xf32, #tpu.memory_space<vmem>>, vector<1x8x128xf32>,
    return
  }
  func.func @transform_0(%arg0: i32) -> (i32, i32, i32) {
    %c0_i32 = arith.constant 0 : i32
    %c0_i32_0 = arith.constant 0 : i32
    %c0_i32_1 = arith.constant 0 : i32
    return %arg0, %c0_i32, %c0_i32_0 : i32, i32, i32
  }
  func.func @transform_1(%arg0: i32) -> (i32, i32, i32) {
    %c0_i32 = arith.constant 0 : i32
    %c0_i32_0 = arith.constant 0 : i32
    %c0_i32_1 = arith.constant 0 : i32
    return %arg0, %c0_i32, %c0_i32_0 : i32, i32, i32
  }
  func.func @transform_2(%arg0: i32) -> (i32, i32, i32) {
    %c0_i32 = arith.constant 0 : i32
    %c0_i32_0 = arith.constant 0 : i32
    %c0_i32_1 = arith.constant 0 : i32
    return %arg0, %c0_i32, %c0_i32_0 : i32, i32, i32
  }
  func.func @transform_3(%arg0: i32) -> (i32, i32, i32) {
    %c0_i32 = arith.constant 0 : i32
    %c0_i32_0 = arith.constant 0 : i32
    %c0_i32_1 = arith.constant 0 : i32
    return %arg0, %c0_i32, %c0_i32_0 : i32, i32, i32
  }
  func.func @transform_4(%arg0: i32) -> (i32, i32, i32) {
    %c0_i32 = arith.constant 0 : i32
    %c0_i32_0 = arith.constant 0 : i32
    %c0_i32_1 = arith.constant 0 : i32
    return %arg0, %c0_i32, %c0_i32_0 : i32, i32, i32
  }
  func.func @transform_5(%arg0: i32) -> (i32, i32, i32) {
    %c0_i32 = arith.constant 0 : i32
    %c0_i32_0 = arith.constant 0 : i32
    %c0_i32_1 = arith.constant 0 : i32
    return %arg0, %c0_i32, %c0_i32_0 : i32, i32, i32
  }
  func.func @transform_6(%arg0: i32) -> (i32, i32, i32) {
    %c0_i32 = arith.constant 0 : i32
    %c0_i32_0 = arith.constant 0 : i32
    %c0_i32_1 = arith.constant 0 : i32
    return %arg0, %c0_i32, %c0_i32_0 : i32, i32, i32
  }
  func.func @transform_7(%arg0: i32) -> (i32, i32, i32) {
    %c0_i32 = arith.constant 0 : i32
    %c0_i32_0 = arith.constant 0 : i32
    %c0_i32_1 = arith.constant 0 : i32
    return %arg0, %c0_i32, %c0_i32_0 : i32, i32, i32
  }
}

</mosaic_0001>

<bundles_post_ra>
// kernel: part_graph_forward.3
= control target key start
LH: loop header
LB: loop body
LE: loop exit
PB: predicated region body
PF: predicated region fallthrough
CT: control target
= control target key end

     0   :  { %s2971_s30 = smov 0   ;;  %s3309_s0 = inlined_call_operand.vmem [shape: f32[2,32,64], index: 0, kind: input, shape index: {}]   ;;  %s3310_s1 = inlined_call_operand.vmem [shape: f32[8,64], index: 1, kind: input, shape index: {}]   ;;  %s3311_s2 = inlined_call_operand.vmem [shape: f32[64,8], index: 2, kind: input, shape index: {}]   ;;  %s3312_s3 = inlined_call_operand.vmem [shape: f32[6,2,64,8], index: 3, kind: input, shape index: {}]   ;;  %s3313_s4 = inlined_call_operand.vmem [shape: f32[6,32,32], index: 4, kind: input, shape index: {}]   ;;  %s3314_s5 = inlined_call_operand.vmem [shape: f32[6,32,8], index: 5, kind: input, shape index: {}]   ;;  %s3315_s6 = inlined_call_operand.vmem [shape: f32[6,32,1], index: 6, kind: input, shape index: {}]   ;;  %s3316_s7 = inlined_call_operand.vmem [shape: f32[6,32,1], index: 7, kind: input, shape index: {}]   ;;  %s3317_s8 = inlined_call_operand.vmem [shape: f32[6,8,8], index: 8, kind: input, shape index: {}]   ;;  %s3318_s9 = inlined_call_operand.vmem [shape: f32[6,8,8], index: 9, kind: input, shape index: {}]   ;;  %s3319_s10 = inlined_call_operand.vmem [shape: f32[6,1,8], index: 10, kind: input, shape index: {}]   ;;  %s3320_s11 = inlined_call_operand.vmem [shape: f32[6,1,8], index: 11, kind: input, shape index: {}]   ;;  %s3321_s12 = inlined_call_operand.vmem [shape: f32[6,8,32], index: 12, kind: input, shape index: {}]   ;;  %s3322_s13 = inlined_call_operand.vmem [shape: f32[6,1,1], index: 13, kind: input, shape index: {}]   ;;  %s3323_s14 = inlined_call_operand.vmem [shape: f32[6,32,32], index: 14, kind: input, shape index: {}]   ;;  %s3324_s15 = inlined_call_operand.vmem [shape: f32[6,32,32], index: 15, kind: input, shape index: {}]   ;;  %s3325_s16 = inlined_call_operand.vmem [shape: f32[6,32,1], index: 16, kind: input, shape index: {}]   ;;  %s3326_s17 = inlined_call_operand.vmem [shape: f32[6,32,1], index: 17, kind: input, shape index: {}]   ;;  %s3327_s18 = inlined_call_operand.vmem [shape: f32[6,16,32], index: 18, kind: input, shape index: {}]   ;;  %s3328_s19 = inlined_call_operand.vmem [shape: f32[6,16,1], index: 19, kind: input, shape index: {}]   ;;  %s3329_s20 = inlined_call_operand.vmem [shape: f32[6,16,1], index: 20, kind: input, shape index: {}]   ;;  %s3330_s21 = inlined_call_operand.vmem [shape: f32[6,3,8], index: 21, kind: input, shape index: {}]   ;;  %s3331_s22 = inlined_call_operand.vmem [shape: f32[6,3,1], index: 22, kind: input, shape index: {}]   ;;  %s3332_s23 = inlined_call_operand.vmem [shape: f32[6,2,16], index: 23, kind: input, shape index: {}]   ;;  %s3333_s24 = inlined_call_operand.vmem [shape: f32[6,2,1], index: 24, kind: input, shape index: {}]   ;;  %s3334_s25 = inlined_call_operand.vmem [shape: f32[6,2,16,64], index: 25, kind: output, shape index: {0}]   ;;  %s3335_s26 = inlined_call_operand.vmem [shape: f32[6,2,3,64], index: 26, kind: output, shape index: {1}]   ;;  %s3336_s27 = inlined_call_operand.vmem [shape: f32[6,2,2,64], index: 27, kind: output, shape index: {2}]  }
   0x1   :  { %3343 = sst [smem:[#allocation7_spill]] %s3309_s0 }
   0x2   :  { %3344 = sst [smem:[#allocation8_spill]] %s3310_s1 }
   0x3   :  { %3345 = sst [smem:[#allocation9_spill]] %s3311_s2 }
   0x4   :  { %3346 = sst [smem:[#allocation10_spill]] %s3312_s3 }
   0x5   :  { %3347 = sst [smem:[#allocation11_spill]] %s3313_s4  ;;  %s2967_s4 = smov 0  }
   0x6   :  { %3348 = sst [smem:[#allocation12_spill]] %s3314_s5 }
   0x7   :  { %3349 = sst [smem:[#allocation13_spill]] %s3315_s6 }
   0x8   :  { %3350 = sst [smem:[#allocation14_spill]] %s3316_s7  ;;  %s2965_s7 = smov 0  }
   0x9   :  { %3351 = sst [smem:[#allocation15_spill]] %s3317_s8  ;;  %s2969_s8 = smov 0  }
   0xa   :  { %3352 = sst [smem:[#allocation16_spill]] %s3318_s9  ;;  %s2973_s9 = smov 0  }
   0xb   :  { %3353 = sst [smem:[#allocation17_spill]] %s3319_s10 }
   0xc   :  { %3354 = sst [smem:[#allocation18_spill]] %s3320_s11 }
   0xd   :  { %3355 = sst [smem:[#allocation19_spill]] %s3322_s13 }
   0xe   :  { %3356 = sst [smem:[#allocation20_spill]] %s3325_s16 }
   0xf   :  { %3357 = sst [smem:[#allocation21_spill]] %s3326_s17 }
  0x10   :  { %3358 = sst [smem:[#allocation22_spill]] %s3328_s19 }
  0x11   :  { %3359 = sst [smem:[#allocation23_spill]] %s3329_s20 }
  0x12   :  { %3360 = sst [smem:[#allocation24_spill]] %s3331_s22 }
  0x13   :  { %3361 = sst [smem:[#allocation25_spill]] %s3333_s24 }
  0x14 LB: > { %3362 = sst [smem:[#allocation2_spill]] %s2814_s8  ;;  %s47_s5 = sadd.s32 1, %s2814_s8  ;;  %s2822_s9 = sphi %s2973_s9, %s38_s9   ;;  %s2818_s30 = sphi %s2971_s30, %s3391_s30   ;;  %s2814_s8 = sphi %s2969_s8, %s3390_s8   ;;  %s2810_s4 = sphi %s2967_s4, %s3389_s4   ;;  %s2806_s7 = sphi %s2965_s7, %s3388_s7  }
  0x15   : > { %3363 = sst [smem:[#allocation3_spill]] %s2818_s30  ;;  %s50_s28 = sadd.s32 1, %s2818_s30 }
  0x16   : > { %3364 = sst [smem:[#allocation4_spill]] %s2822_s9  ;;  %p48_p0 = scmp.ge.s32.totalorder %s47_s5, 2 }
  0x17   : > { %p2605_p1 = scmp.ge.s32.totalorder %s2822_s9, 1  ;;  %p973_p2 = scmp.lt.s32.totalorder %s2822_s9, 13 }
  0x18   : > { %s3393_s5 = smov (%p48_p0, %s47_s5), 0  ;;  %s3395_s28 = smov (!%p48_p0, %s50_s28), %s2818_s30 }
  0x19   : > { %3365 = sst [smem:[#allocation5_spill]] %s3393_s5  ;;  %p974_p3 = pnand %p2605_p1, %p973_p2 }
  0x1a   : > { %p52_p4 = scmp.ge.s32.totalorder %s3395_s28, 6  ;;  %s3367_s29 = sld [smem:[#allocation8_spill]] (!%p974_p3) }
  0x1b   : > { %977 = sbr.rel (%p974_p3) target bundleno = 1232 (0x4d0), region = 120  ;;  %p1171_p5 = scmp.lt.s32.totalorder (!%p974_p3), %s2810_s4, 5 }
  0x1c   : > { %s3397_s28 = smov (%p52_p4, %s3395_s28), 0  ;;  %p1166_p6 = scmp.lt.s32.totalorder (!%p974_p3), %s2806_s7, 1 }
  0x1d   : > { %3366 = sst [smem:[#allocation6_spill]] %s3397_s28 }
  0x1e   : > { %s3368_s13 = sld [smem:[#allocation19_spill]] (!%p974_p3) }
  0x1f   : > { %s3369_s10 = sld [smem:[#allocation14_spill]] (!%p974_p3) }
  0x20   : > { %v1301_v0 = vld [vmem:[%s3367_s29] sm:$0xff]  ;;  %v2824_v1 = vmov 0   ;;  %s3399_s4 = smov (!%p1171_p5, %s2810_s4), 5  ;;  %s3401_s7 = smov (!%p1166_p6, %s2806_s7), 1  ;;  %vm1326_vm0 = vcmask 64512   ;;  %vm1368_vm1 = vcmask 261120  }
  0x21   : > { %2761 = vset.pattern.permute.xlu1 %v2824_v1  ;;  %2760 = vset.pattern.permute.xlu0 %v2824_v1  ;;  %s3003_s1 = sshll.u32 %s3399_s4, 5  ;;  %s3370_s30 = sld [smem:[#allocation13_spill]]  ;;  %vm1723_vm2 = vcmask 523264   ;;  %vm2131_vm3 = vcmask 130048   ;;  %vm2122_vm4 = vcmask 518144   ;;  %vm2155_vm5 = vcmask 517120  }
  0x22   : > { %2718 = vmatpush.msra.mxu1 %v1301_v0  ;;  %1354 = vmatpush.msra.mxu0 %v1301_v0  ;;  %s3371_s9 = sld [smem:[#allocation12_spill]]  ;;  %s2706_s3 = sshll.u32 %s3401_s7, 5 }
  0x23   : > { %2762 = vset.pattern.permute.xlu2 %v2824_v1  ;;  %s3372_s28 = sld [smem:[#allocation7_spill]] }
  0x24   : > { %s3373_s6 = sld [smem:[#allocation11_spill]]  ;;  %s3374_s5 = scalar_lea.vmem %s3368_s13, %s3399_s4 }
  0x25   : > { %s3013_s29 = scalar_lea.vmem %s3369_s10, %s3003_s1  ;;  %v2763_v20 = vld [vmem:[%s3374_s5] ss:$0 sm:$0xff]  ;;  %s3375_s16 = sld [smem:[#allocation20_spill]] }
  0x26   : > { %v1441_v2 = vld [vmem:[%s3013_s29 + $0x18] sm:$0xff]  ;;  %v1440_v9 = vld [vmem:[%s3013_s29 + $0x10] sm:$0xff]  ;;  %v1439_v16 = vld [vmem:[%s3013_s29 + $0x8] sm:$0xff]  ;;  %s3376_s17 = sld [smem:[#allocation21_spill]]  ;;  %s3087_s10 = sshll.u32 %s3399_s4, 4 }
  0x27   : > { %s3019_s8 = scalar_lea.vmem %s3370_s30, %s3003_s1  ;;  %1459 = vperm.xlu1 %2761, %v1441_v2   ;;  %1454 = vperm.xlu2 %2762, %v1440_v9   ;;  %v1438_v17 = vld [vmem:[%s3013_s29] sm:$0xff]  ;;  %s3377_s19 = sld [smem:[#allocation22_spill]] }
  0x28   : > { %v1413_v3 = vld [vmem:[%s3019_s8 + $0x18] sm:$0xff]  ;;  %s3027_s2 = scalar_lea.vmem %s3371_s9, %s3003_s1  ;;  %v1412_v11 = vld [vmem:[%s3019_s8 + $0x10] sm:$0xff]  ;;  %v1411_v12 = vld [vmem:[%s3019_s8 + $0x8] sm:$0xff]  ;;  %s3378_s20 = sld [smem:[#allocation23_spill]] }
  0x29   : > { %1431 = vperm.xlu0 %2760, %v1413_v3   ;;  %v1325_v4 = vld [vmem:[%s3027_s2 + $0x18] sm:$0xff]  ;;  %s1170_s0 = scalar_lea.vmem %s3372_s28, %s2706_s3  ;;  %v1322_v5 = vld [vmem:[%s3027_s2] sm:$0xff]  ;;  %v1323_v14 = vld [vmem:[%s3027_s2 + $0x8] sm:$0xff]  ;;  %s3379_s22 = sld [smem:[#allocation24_spill]] }
  0x2a   : > { %2650 = vmatmul.msk.f32.vlgmr.msra.gmra.mxu1 %vm1326_vm0, %v1325_v4  ;;  %v3036_v6 = vld [vmem:[%s1170_s0 + $0x18] sm:$0xff]  ;;  %v3038_v7 = vld [vmem:[%s1170_s0 + $0x10] sm:$0xff]  ;;  %2647 = vmatmul.msk.f32.vlgmr.msra.gmra.mxu0 %vm1326_vm0, %v1322_v5  ;;  %v3042_v8 = vld [vmem:[%s1170_s0 + $0x8] sm:$0xff]  ;;  %s3048_s11 = scalar_lea.vmem %s3373_s6, %s3003_s1  ;;  %s3380_s24 = sld [smem:[#allocation25_spill]] }
  0x2b   : > { %1393 = vmatpush.msrb.mxu1 %v3036_v6  ;;  %v3052_v10 = vld [vmem:[%s1170_s0] sm:$0xff]  ;;  %v1319_v18 = vld [vmem:[%s3048_s11 + $0x8] sm:$0xff]  ;;  %v1324_v19 = vld [vmem:[%s3027_s2 + $0x10] sm:$0xff]  ;;  %s3098_s0 = sshll.u32 %s3399_s4, 2  ;;  %s2608_s30 = sshll.u32 %s3401_s7, 3 }
  0x2c   : > { %v1318_v13 = vld [vmem:[%s3048_s11] sm:$0xff]  ;;  %v1320_v23 = vld [vmem:[%s3048_s11 + $0x10] sm:$0xff]  ;;  %s1240_s9 = scalar_lea.vmem %s3376_s17, %s3003_s1  ;;  %v1321_v27 = vld [vmem:[%s3048_s11 + $0x18] sm:$0xff]  ;;  %s1177_s5 = sadd.s32 %s3087_s10, %s2608_s30 }
  0x2d   : > { %1394 = vmatpush.msrb.mxu1 %v3038_v7  ;;  %v1410_v15 = vld [vmem:[%s3019_s8] sm:$0xff]  ;;  %s1235_s8 = scalar_lea.vmem %s3375_s16, %s3003_s1  ;;  %v2000_v24 = vld [vmem:[%s1240_s9 + $0x18] sm:$0xff]  ;;  %v1999_v26 = vld [vmem:[%s1240_s9 + $0x10] sm:$0xff]  ;;  %s1250_s11 = scalar_lea.vmem %s3377_s19, %s3087_s10 }
  0x2e   : > { %v1972_v21 = vld [vmem:[%s1235_s8 + $0x18] sm:$0xff]  ;;  %v1971_v22 = vld [vmem:[%s1235_s8 + $0x10] sm:$0xff]  ;;  %v1970_v25 = vld [vmem:[%s1235_s8 + $0x8] sm:$0xff]  ;;  %s1255_s28 = scalar_lea.vmem %s3378_s20, %s3087_s10  ;;  %s3114_s13 = sshll.u32 %s3399_s4, 3 }
  0x2f   : > { %1395 = vmatpush.msrb.mxu1 %v3042_v8  ;;  %1421 = vperm.xlu1 %2761, %v1411_v12   ;;  %v1969_v28 = vld [vmem:[%s1235_s8] sm:$0xff]  ;;  %v1998_v29 = vld [vmem:[%s1240_s9 + $0x8] sm:$0xff]  ;;  %s3101_s8 = sshll.u32 %s3399_s4, 1  ;;  %s2610_s16 = sshll.u32 %s1177_s5, 3 }
  0x30   : > { %1416 = vperm.xlu2 %2762, %v1410_v15   ;;  %v1997_v30 = vld [vmem:[%s1240_s9] sm:$0xff]  ;;  %v2061_v31 = vld [vmem:[%s1250_s11 + $0x8] sm:$0xff]  ;;  %s1263_s9 = scalar_lea.vmem %s3379_s22, %s3098_s0  ;;  %s3383_s22 = sld [smem:[#allocation10_spill]] }
  0x31   : > { %1396 = vmatpush.msrb.mxu1 %v3052_v10  ;;  %1426 = vperm.xlu0 %2760, %v1412_v11   ;;  %v2060_v32 = vld [vmem:[%s1250_s11] sm:$0xff]  ;;  %v2075_v33 = vld [vmem:[%s1255_s28 + $0x8] sm:$0xff]  ;;  %s1271_s11 = scalar_lea.vmem %s3380_s24, %s3101_s8  ;;  %s3384_s2 = sld [smem:[#allocation9_spill]] }
  0x32   : > { %2651 = vmatmul.msk.f32.vlgmr.msrb.gmra.mxu1 %vm1368_vm1, %v1318_v13  ;;  %2648 = vmatmul.msk.f32.gmra.mxu0 %vm1326_vm0, %v1323_v14  ;;  %v2074_v34 = vld [vmem:[%s1255_s28] sm:$0xff]  ;;  %s3381_s28 = sld [smem:[#allocation16_spill]]  ;;  %s1217_s30 = scalar_lea.vmem %s3321_s12, %s3114_s13 }
  0x33   : > { %v2093_v35 = vld [vmem:[%s1263_s9] sm:$0x7]  ;;  %s3382_s9 = sld [smem:[#allocation15_spill]] }
  0x34   : > { %v2125_v36 = vld [vmem:[%s1271_s11] sm:$0x3]  ;;  %s1267_s11 = scalar_lea.vmem %s3332_s23, %s3101_s8 }
  0x36   : > { %s3127_s24 = scalar_lea.vmem %s3383_s22, %s2610_s16  ;;  %s1245_s16 = scalar_lea.vmem %s3327_s18, %s3087_s10 }
  0x37   : > { %1444 = vperm.xlu1 %2761, %v1438_v17   ;;  %v1302_v40 = vld [vmem:[%s3384_s2] sm:$0xff]  ;;  %v1303_v44 = vld [vmem:[%s3384_s2 + $0x8] sm:$0xff]  ;;  %v1304_v48 = vld [vmem:[%s3384_s2 + $0x10] sm:$0xff] }
  0x38   : > { %1868 = vperm.xlu2 %2762, %v2763_v20   ;;  %s1207_s17 = scalar_lea.vmem %s3381_s28, %s3114_s13  ;;  %v1310_v41 = vld [vmem:[%s3127_s24] sm:$0xff]  ;;  %s3386_s28 = sld [smem:[#allocation18_spill]]  ;;  %v1311_v45 = vld [vmem:[%s3127_s24 + $0x8] sm:$0xff]  ;;  %v1312_v49 = vld [vmem:[%s3127_s24 + $0x10] sm:$0xff] }
  0x39   : > { %1449 = vperm.xlu0 %2760, %v1439_v16   ;;  %s1203_s19 = scalar_lea.vmem %s3382_s9, %s3114_s13  ;;  %v1471_v38 = vld [vmem:[%s1207_s17] sm:$0xff]  ;;  %s3385_s17 = sld [smem:[#allocation17_spill]]  ;;  %v1305_v53 = vld [vmem:[%s3384_s2 + $0x18] sm:$0xff]  ;;  %v1307_v17 = vld [vmem:[%s3384_s2 + $0x28] sm:$0xff] }
  0x3a   : > { %2652 = vmatmul.msk.f32.gmra.mxu1 %vm1368_vm1, %v1319_v18  ;;  %2649 = vmatmul.msk.f32.gmra.mxu0 %vm1326_vm0, %v1324_v19  ;;  %v1470_v39 = vld [vmem:[%s1203_s19] sm:$0xff]  ;;  %v1313_v54 = vld [vmem:[%s3127_s24 + $0x18] sm:$0xff]  ;;  %v1315_v20 = vld [vmem:[%s3127_s24 + $0x28] sm:$0xff]  ;;  %s2640_s13 = sshll.u32 %s3401_s7, 1 }
  0x3b   : > { %1511 = vmatpush.msra.mxu2 %v1471_v38  ;;  %1576 = vmatpush.msra.mxu3 %v1470_v39  ;;  %v1306_v62 = vld [vmem:[%s3384_s2 + $0x20] sm:$0xff]  ;;  %s1278_s20 = sadd.s32 %s2640_s13, %s3098_s0 }
  0x3c   : > { %2655 = vmatmul.msk.f32.vlgmr.msra.gmra.mxu2 %vm1326_vm0, %v1302_v40  ;;  %2663 = vmatmul.msk.f32.vlgmr.msra.gmra.mxu3 %vm1326_vm0, %v1310_v41  ;;  %v1314_v63 = vld [vmem:[%s3127_s24 + $0x20] sm:$0xff]  ;;  %s2642_s19 = sshll.u32 %s1278_s20, 3 }
  0x3d   : > { %1911 = vmatpush.msrb.mxu2 %v3036_v6  ;;  %s1280_s3 = scalar_lea.vmem %s3334_s25, %s2642_s19 }
  0x3e   : > { %s1213_s6 = scalar_lea.vmem %s3386_s28, %s3399_s4 }
  0x3f   : > { %1985 = vperm.xlu1 %2761, %v1971_v22   ;;  %s1210_s22 = scalar_lea.vmem %s3385_s17, %s3399_s4  ;;  %1912 = vmatpush.msrb.mxu2 %v3038_v7  ;;  %s1259_s4 = scalar_lea.vmem %s3330_s21, %s3098_s0 }
  0x40   : > { %2018 = vperm.xlu2 %2762, %v2000_v24   ;;  %v1308_v24 = vld [vmem:[%s3384_s2 + $0x30] sm:$0xff] }
  0x41   : > { %1990 = vperm.xlu0 %2760, %v1972_v21   ;;  %1913 = vmatpush.msrb.mxu2 %v3042_v8 }
  0x42   : > { %2653 = vmatmul.msk.f32.gmra.mxu1 %vm1368_vm1, %v1320_v23  ;;  %v1634_v23 = vld [vmem:[%s1217_s30] sm:$0xff]  ;;  %s1225_s30 = scalar_lea.vmem %s3323_s14, %s3003_s1 }
  0x43   : > { %1914 = vmatpush.msrb.mxu2 %v3052_v10 }
  0x44   : > { %2656 = vmatmul.msk.f32.gmra.mxu2 %vm1326_vm0, %v1303_v44  ;;  %2664 = vmatmul.msk.f32.gmra.mxu3 %vm1326_vm0, %v1311_v45 }
  0x47   : > { %2013 = vperm.xlu1 %2761, %v1999_v26   ;;  %v1309_v26 = vld [vmem:[%s3384_s2 + $0x38] sm:$0xff] }
  0x48   : > { %1975 = vperm.xlu2 %2762, %v1969_v28  }
  0x49   : > { %1980 = vperm.xlu0 %2760, %v1970_v25   ;;  %v1316_v25 = vld [vmem:[%s3127_s24 + $0x30] sm:$0xff] }
  0x4a   : > { %2654 = vmatmul.msk.f32.gmra.mxu1 %vm1368_vm1, %v1321_v27  ;;  %v1317_v27 = vld [vmem:[%s3127_s24 + $0x38] sm:$0xff] }
  0x4c   : > { %2657 = vmatmul.msk.f32.gmra.mxu2 %vm1326_vm0, %v1304_v48  ;;  %2665 = vmatmul.msk.f32.gmra.mxu3 %vm1326_vm0, %v1312_v49 }
  0x4f   : > { %2003 = vperm.xlu1 %2761, %v1997_v30  }
  0x50   : > { %2069 = vperm.xlu2 %2762, %v2061_v31  }
  0x51   : > { %2008 = vperm.xlu0 %2760, %v1998_v29  }
  0x54   : > { %2658 = vmatmul.msk.f32.gmra.mxu2 %vm1326_vm0, %v1305_v53  ;;  %2666 = vmatmul.msk.f32.gmra.mxu3 %vm1326_vm0, %v1313_v54 }
  0x57   : > { %2083 = vperm.xlu1 %2761, %v2075_v33   ;;  %v2764_v33 = vld [vmem:[%s1210_s22] ss:$0 sm:$0xff]  ;;  %s1230_s22 = scalar_lea.vmem %s3324_s15, %s3003_s1 }
  0x58   : > { %2078 = vperm.xlu2 %2762, %v2074_v34  }
  0x59   : > { %2064 = vperm.xlu0 %2760, %v2060_v32  }
  0x5c   : > { %2659 = vmatmul.msk.f32.gmra.mxu2 %vm1326_vm0, %v1306_v62  ;;  %2667 = vmatmul.msk.f32.gmra.mxu3 %vm1326_vm0, %v1314_v63 }
  0x5f   : > { %2128 = vperm.xlu1 %2761, %v2125_v36  }
  0x61   : > { %2096 = vperm.xlu0 %2760, %v2093_v35  }
  0x64   : > { %2660 = vmatmul.msk.f32.gmra.mxu2 %vm1326_vm0, %v1307_v17  ;;  %2668 = vmatmul.msk.f32.gmra.mxu3 %vm1326_vm0, %v1315_v20 }
  0x6c   : > { %2661 = vmatmul.msk.f32.gmra.mxu2 %vm1326_vm0, %v1308_v24  ;;  %2669 = vmatmul.msk.f32.gmra.mxu3 %vm1326_vm0, %v1316_v25 }
  0x74   : > { %2662 = vmatmul.msk.f32.gmra.mxu2 %vm1326_vm0, %v1309_v26  ;;  %2670 = vmatmul.msk.f32.gmra.mxu3 %vm1326_vm0, %v1317_v27 }
  0x81   : > { %v1455_v55 = vpop.permute.xlu2 %1454 }
  0x8a   : > { %v1417_v5 = vpop.permute.xlu2 %1416 }
  0x99   : > { %v1460_v51 = vpop.permute.xlu1 %1459 }
  0x9b   : > { %v1432_v50 = vpop.permute.xlu0 %1431 }
  0xa1   : > { %v1422_v59 = vpop.permute.xlu1 %1421 }
  0xa3   : > { %v1427_v57 = vpop.permute.xlu0 %1426 }
  0xa7   : > { %v1365_v37 = vpop.f32.mrf.mxu1  ;;  %v1356_v42 = vpop.f32.mrf.mxu0 }
  0xa9   : > { %v1445_v16 = vpop.permute.xlu1 %1444 }
  0xab   : > { %v1450_v13 = vpop.permute.xlu0 %1449 }
  0xaf   : > { %v1398_v43 = vpop.f32.mrf.mxu1  ;;  %v1359_v46 = vpop.f32.mrf.mxu0 }
  0xb0   : > { %v1399_v0 = vadd.f32 %v1398_v43, %v1356_v42 }
  0xb2   : > { %v1434_v9 = vmul.f32 %v1417_v5, %v1399_v0 }
  0xb4   : > { %v1462_v19 = vadd.f32 %v1445_v16, %v1434_v9 }
  0xb6   : > { %v1466_v22 = vmax.f32 %v1462_v19, 0.0 }
  0xb7   : > { %v1401_v47 = vpop.f32.mrf.mxu1  ;;  %v1362_v56 = vpop.f32.mrf.mxu0 }
  0xb8   : > { %v1402_v60 = vadd.f32 %v1401_v47, %v1359_v46 }
  0xba   : > { %v1435_v3 = vmul.f32 %v1422_v59, %v1402_v60 }
  0xbc   : > { %v1463_v15 = vadd.f32 %v1450_v13, %v1435_v3 }
  0xbe   : > { %v1467_v21 = vmax.f32 %v1463_v15, 0.0 }
  0xbf   : > { %v1404_v52 = vpop.f32.mrf.mxu1  ;;  %v1513_v28 = vpop.f32.mrf.mxu2 }
  0xc0   : > { %v1405_v58 = vadd.f32 %v1404_v52, %v1362_v56  ;;  %v1578_v29 = vpop.f32.mrf.mxu3 }
  0xc1   : > { %v1579_v32 = vadd.f32 %v1578_v29, %v1513_v28 }
  0xc2   : > { %v1436_v1 = vmul.f32 %v1427_v57, %v1405_v58 }
  0xc3   : > { %v1606_v36 = vmul.f32 %v2764_v33, %v1579_v32 }
  0xc4   : > { %v1464_v12 = vadd.f32 %v1455_v55, %v1436_v1 }
  0xc6   : > { %v1468_v18 = vmax.f32 %v1464_v12, 0.0 }
  0xc7   : > { %v1407_v61 = vpop.f32.mrf.mxu1  ;;  %v1516_v30 = vpop.f32.mrf.mxu2 }
  0xc8   : > { %v1408_v2 = vadd.f32 %v1407_v61, %v1365_v37  ;;  %v1581_v31 = vpop.f32.mrf.mxu3  ;;  %v2765_v37 = vld [vmem:[%s1213_s6] ss:$0 sm:$0xff] }
  0xc9   : > { %v1618_v38 = vadd.f32 %v2765_v37, %v1606_v36  ;;  %v1582_v39 = vadd.f32 %v1581_v31, %v1516_v30 }
  0xca   : > { %v1437_v4 = vmul.f32 %v1432_v50, %v1408_v2 }
  0xcb   : > { %v1626_v40 = vmax.f32 %v1618_v38, 0.0  ;;  %v1607_v41 = vmul.f32 %v2764_v33, %v1582_v39 }
  0xcc   : > { %v1465_v11 = vadd.f32 %v1460_v51, %v1437_v4 }
  0xcd   : > { %v1619_v46 = vadd.f32 %v2765_v37, %v1607_v41 }
  0xce   : > { %v1469_v14 = vmax.f32 %v1465_v11, 0.0 }
  0xcf   : > { %v1519_v34 = vpop.f32.mrf.mxu2  ;;  %v1627_v48 = vmax.f32 %v1619_v46, 0.0 }
  0xd0   : > { %1650 = vmatpush.msrb.mxu0 %v1469_v14  ;;  %v1584_v35 = vpop.f32.mrf.mxu3 }
  0xd1   : > { %v1585_v45 = vadd.f32 %v1584_v35, %v1519_v34 }
  0xd2   : > { %1651 = vmatpush.msrb.mxu0 %v1468_v18 }
  0xd3   : > { %v1608_v47 = vmul.f32 %v2764_v33, %v1585_v45 }
  0xd4   : > { %1652 = vmatpush.msrb.mxu0 %v1467_v21 }
  0xd5   : > { %v1620_v52 = vadd.f32 %v2765_v37, %v1608_v47 }
  0xd6   : > { %1653 = vmatpush.msrb.mxu0 %v1466_v22 }
  0xd7   : > { %2671 = vmatmul.msk.f32.vlgmr.msrb.gmra.mxu0 %vm1368_vm1, %v1634_v23  ;;  %v1522_v42 = vpop.f32.mrf.mxu2  ;;  %v1628_v54 = vmax.f32 %v1620_v52, 0.0 }
  0xd8   : > { %v1587_v43 = vpop.f32.mrf.mxu3 }
  0xd9   : > { %v1588_v51 = vadd.f32 %v1587_v43, %v1522_v42 }
  0xdb   : > { %v1609_v53 = vmul.f32 %v2764_v33, %v1588_v51 }
  0xdd   : > { %v1621_v56 = vadd.f32 %v2765_v37, %v1609_v53 }
  0xdf   : > { %v1525_v49 = vpop.f32.mrf.mxu2  ;;  %v1629_v60 = vmax.f32 %v1621_v56, 0.0 }
  0xe0   : > { %v1590_v50 = vpop.f32.mrf.mxu3 }
  0xe1   : > { %v1591_v55 = vadd.f32 %v1590_v50, %v1525_v49 }
  0xe3   : > { %v1610_v59 = vmul.f32 %v2764_v33, %v1591_v55 }
  0xe5   : > { %v1622_v62 = vadd.f32 %v2765_v37, %v1610_v59 }
  0xe7   : > { %v1528_v57 = vpop.f32.mrf.mxu2  ;;  %v1630_v2 = vmax.f32 %v1622_v62, 0.0 }
  0xe8   : > { %v1593_v58 = vpop.f32.mrf.mxu3 }
  0xe9   : > { %v1594_v61 = vadd.f32 %v1593_v58, %v1528_v57 }
  0xeb   : > { %v1611_v1 = vmul.f32 %v2764_v33, %v1594_v61 }
  0xed   : > { %v1623_v4 = vadd.f32 %v2765_v37, %v1611_v1 }
  0xef   : > { %v1531_v63 = vpop.f32.mrf.mxu2  ;;  %v1631_v9 = vmax.f32 %v1623_v4, 0.0 }
  0xf0   : > { %v1596_v0 = vpop.f32.mrf.mxu3 }
  0xf1   : > { %v1597_v3 = vadd.f32 %v1596_v0, %v1531_v63 }
  0xf3   : > { %v1612_v5 = vmul.f32 %v2764_v33, %v1597_v3 }
  0xf5   : > { %v1624_v14 = vadd.f32 %v2765_v37, %v1612_v5 }
  0xf7   : > { %v1534_v11 = vpop.f32.mrf.mxu2  ;;  %v1632_v16 = vmax.f32 %v1624_v14, 0.0 }
  0xf8   : > { %v1599_v12 = vpop.f32.mrf.mxu3 }
  0xf9   : > { %v1600_v13 = vadd.f32 %v1599_v12, %v1534_v11 }
  0xfb   : > { %v1613_v15 = vmul.f32 %v2764_v33, %v1600_v13 }
  0xfd   : > { %v1625_v17 = vadd.f32 %v2765_v37, %v1613_v15 }
  0xff   : > { %v1633_v18 = vmax.f32 %v1625_v17, 0.0 }
 0x154   : > { %v1655_v44 = vpop.f32.mrf.mxu0 }
 0x155   : > { %1697 = vmatpush.msra.mxu1 %v1655_v44 }
 0x156   : > { %2672 = vmatmul.msk.f32.vlgmr.msra.gmra.mxu1 %vm1326_vm0, %v1626_v40 }
 0x15e   : > { %2673 = vmatmul.msk.f32.gmra.mxu1 %vm1326_vm0, %v1627_v48 }
 0x166   : > { %2674 = vmatmul.msk.f32.gmra.mxu1 %vm1326_vm0, %v1628_v54 }
 0x16e   : > { %2675 = vmatmul.msk.f32.gmra.mxu1 %vm1326_vm0, %v1629_v60 }
 0x176   : > { %2676 = vmatmul.msk.f32.gmra.mxu1 %vm1326_vm0, %v1630_v2 }
 0x17e   : > { %2677 = vmatmul.msk.f32.gmra.mxu1 %vm1326_vm0, %v1631_v9 }
 0x186   : > { %2678 = vmatmul.msk.f32.gmra.mxu1 %vm1326_vm0, %v1632_v16 }
 0x18e   : > { %2679 = vmatmul.msk.f32.gmra.mxu1 %vm1326_vm0, %v1633_v18 }
 0x1d3   : > { %v1699_v19 = vpop.f32.mrf.mxu1 }
 0x1d4   : > { %v1724_v32 = vsel %vm1723_vm2, %v1699_v19, -inf }
 0x1db   : > { %v1702_v20 = vpop.f32.mrf.mxu1 }
 0x1dc   : > { %v1725_v27 = vsel %vm1723_vm2, %v1702_v20, -inf }
 0x1e3   : > { %v1705_v21 = vpop.f32.mrf.mxu1 }
 0x1e4   : > { %v1726_v33 = vsel %vm1723_vm2, %v1705_v21, -inf }
 0x1eb   : > { %v1708_v22 = vpop.f32.mrf.mxu1 }
 0x1ec   : > { %v1727_v34 = vsel %vm1723_vm2, %v1708_v22, -inf }
 0x1f3   : > { %v1711_v23 = vpop.f32.mrf.mxu1 }
 0x1f4   : > { %v1728_v28 = vsel %vm1723_vm2, %v1711_v23, -inf }
 0x1f5   : > { %v1729_v36 = vmax.f32 %v1724_v32, %v1728_v28 }
 0x1fb   : > { %v1714_v24 = vpop.f32.mrf.mxu1 }
 0x1fc   : > { %v1730_v26 = vsel %vm1723_vm2, %v1714_v24, -inf }
 0x1fd   : > { %v1731_v30 = vmax.f32 %v1725_v27, %v1730_v26 }
 0x1ff   : > { %v1736_v39 = vmax.f32 %v1729_v36, %v1731_v30 }
 0x203   : > { %v1717_v25 = vpop.f32.mrf.mxu1 }
 0x204   : > { %v1732_v29 = vsel %vm1723_vm2, %v1717_v25, -inf }
 0x205   : > { %v1733_v37 = vmax.f32 %v1726_v33, %v1732_v29 }
 0x20b   : > { %v1720_v31 = vpop.f32.mrf.mxu1 }
 0x20c   : > { %v1734_v35 = vsel %vm1723_vm2, %v1720_v31, -inf }
 0x20d   : > { %v1735_v38 = vmax.f32 %v1727_v34, %v1734_v35 }
 0x20f   : > { %v1737_v40 = vmax.f32 %v1733_v37, %v1735_v38 }
 0x211   : > { %v1738_v41 = vmax.f32 %v1736_v39, %v1737_v40 }
 0x213   : > { %v1739_v42 = vrot.slane %v1738_v41, 4 }
 0x215   : > { %v1740_v43 = vmax.f32 %v1738_v41, %v1739_v42 }
 0x217   : > { %v1741_v44 = vrot.slane %v1740_v43, 2 }
 0x219   : > { %v1742_v45 = vmax.f32 %v1740_v43, %v1741_v44  ;;  %v1883_v43 = vld [vmem:[%s1230_s22] sm:$0xff] }
 0x21a   : > { %2692 = vmatmul.msk.f32.vlgmr.msrb.gmra.mxu2 %vm1368_vm1, %v1883_v43 }
 0x21b   : > { %v1743_v46 = vrot.slane %v1742_v45, 1 }
 0x21d   : > { %v1744_v47 = vmax.f32 %v1742_v45, %v1743_v46  ;;  %v1884_v45 = vld [vmem:[%s1230_s22 + $0x8] sm:$0xff] }
 0x21f   : > { %v1745_v48 = vsub.f32 %v1699_v19, %v1744_v47  ;;  %v1746_v49 = vsub.f32 %v1702_v20, %v1744_v47  ;;  %v1747_v50 = vsub.f32 %v1705_v21, %v1744_v47  ;;  %v1748_v51 = vsub.f32 %v1708_v22, %v1744_v47 }
 0x220   : > { %v1749_v52 = vsub.f32 %v1711_v23, %v1744_v47  ;;  %v1750_v56 = vsub.f32 %v1714_v24, %v1744_v47  ;;  %v1751_v58 = vsub.f32 %v1717_v25, %v1744_v47  ;;  %v1752_v60 = vsub.f32 %v1720_v31, %v1744_v47  ;;  %v1885_v47 = vld [vmem:[%s1230_s22 + $0x10] sm:$0xff] }
 0x221   : > { %v1753_v53 = vmul.f32 1.442695, %v1745_v48  ;;  %v1755_v54 = vmul.f32 1.442695, %v1746_v49  ;;  %v1757_v55 = vmul.f32 1.442695, %v1747_v50  ;;  %v1869_v48 = vpop.permute.xlu2 %1868 }
 0x222   : > { %v1759_v57 = vmul.f32 1.442695, %v1748_v51  ;;  %v1761_v59 = vmul.f32 1.442695, %v1749_v52  ;;  %v1763_v61 = vmul.f32 1.442695, %v1750_v56  ;;  %2693 = vmatmul.msk.f32.gmra.mxu2 %vm1368_vm1, %v1884_v45 }
 0x223   : > { %2766 = vpow2.f32 %v1753_v53  ;;  %v1765_v62 = vmul.f32 1.442695, %v1751_v58  ;;  %v1767_v1 = vmul.f32 1.442695, %v1752_v60  ;;  %v1886_v52 = vld [vmem:[%s1230_s22 + $0x18] sm:$0xff]  ;;  %v1881_v60 = vld [vmem:[%s1225_s30 + $0x10] sm:$0xff] }
 0x224   : > { %2768 = vpow2.f32 %v1755_v54  ;;  %v2092_v45 = vld [vmem:[%s1259_s4] sm:$0x7] }
 0x225   : > { %2770 = vpow2.f32 %v1757_v55 }
 0x226   : > { %2772 = vpow2.f32 %v1759_v57 }
 0x227   : > { %2774 = vpow2.f32 %v1761_v59  ;;  %v1879_v59 = vld [vmem:[%s1225_s30] sm:$0xff] }
 0x228   : > { %2776 = vpow2.f32 %v1763_v61 }
 0x229   : > { %v2767_v63 = vpop.eup %2766  ;;  %2778 = vpow2.f32 %v1765_v62 }
 0x22a   : > { %v2769_v0 = vpop.eup %2768  ;;  %v1769_v2 = vsel %vm1723_vm2, %v2767_v63, 0.0  ;;  %2780 = vpow2.f32 %v1767_v1  ;;  %2694 = vmatmul.msk.f32.gmra.mxu2 %vm1368_vm1, %v1885_v47  ;;  %v1986_v1 = vpop.permute.xlu1 %1985 }
 0x22b   : > { %v2771_v3 = vpop.eup %2770  ;;  %v1770_v4 = vsel %vm1723_vm2, %v2769_v0, 0.0 }
 0x22c   : > { %v2773_v5 = vpop.eup %2772  ;;  %v1771_v9 = vadd.f32 %v1770_v4, %v1769_v2  ;;  %v1772_v11 = vsel %vm1723_vm2, %v2771_v3, 0.0 }
 0x22d   : > { %v2775_v12 = vpop.eup %2774  ;;  %v1774_v14 = vsel %vm1723_vm2, %v2773_v5, 0.0 }
 0x22e   : > { %v1773_v13 = vadd.f32 %v1772_v11, %v1771_v9  ;;  %v2777_v15 = vpop.eup %2776  ;;  %v1776_v17 = vsel %vm1723_vm2, %v2775_v12, 0.0 }
 0x22f   : > { %v2779_v18 = vpop.eup %2778  ;;  %v1778_v20 = vsel %vm1723_vm2, %v2777_v15, 0.0 }
 0x230   : > { %v1775_v16 = vadd.f32 %v1774_v14, %v1773_v13  ;;  %v2781_v21 = vpop.eup %2780  ;;  %v1780_v23 = vsel %vm1723_vm2, %v2779_v18, 0.0 }
 0x231   : > { %v1782_v25 = vsel %vm1723_vm2, %v2781_v21, 0.0 }
 0x232   : > { %v1777_v19 = vadd.f32 %v1776_v17, %v1775_v16  ;;  %2695 = vmatmul.msk.f32.gmra.mxu2 %vm1368_vm1, %v1886_v52  ;;  %v2014_v9 = vpop.permute.xlu1 %2013 }
 0x234   : > { %v1779_v22 = vadd.f32 %v1778_v20, %v1777_v19 }
 0x236   : > { %v1781_v24 = vadd.f32 %v1780_v23, %v1779_v22 }
 0x238   : > { %v1783_v26 = vadd.f32 %v1782_v25, %v1781_v24 }
 0x23a   : > { %v1784_v27 = vrot.slane %v1783_v26, 4 }
 0x23c   : > { %v1785_v28 = vadd.f32 %v1784_v27, %v1783_v26  ;;  %v2004_v26 = vpop.permute.xlu1 %2003 }
 0x23e   : > { %v1786_v29 = vrot.slane %v1785_v28, 2 }
 0x240   : > { %v1787_v30 = vadd.f32 %v1786_v29, %v1785_v28 }
 0x242   : > { %v1788_v31 = vrot.slane %v1787_v30, 1 }
 0x244   : > { %v1789_v32 = vadd.f32 %v1788_v31, %v1787_v30  ;;  %v2029_v31 = vld [vmem:[%s1245_s16] sm:$0xff] }
 0x246   : > { %2782 = vrcp.f32 %v1789_v32  ;;  %v2030_v32 = vld [vmem:[%s1245_s16 + $0x8] sm:$0xff] }
 0x24c   : > { %v2783_v33 = vpop.eup %2782 }
 0x24d   : > { %v1798_v34 = vmul.f32 %v2783_v33, %v2781_v21  ;;  %v1792_v35 = vmul.f32 %v2783_v33, %v2769_v0  ;;  %v1791_v36 = vmul.f32 %v2783_v33, %v2767_v63  ;;  %v1797_v37 = vmul.f32 %v2783_v33, %v2779_v18  ;;  %v1991_v0 = vpop.permute.xlu0 %1990 }
 0x24e   : > { %v1796_v38 = vmul.f32 %v2783_v33, %v2777_v15  ;;  %v1795_v39 = vmul.f32 %v2783_v33, %v2775_v12  ;;  %v1794_v40 = vmul.f32 %v2783_v33, %v2773_v5  ;;  %v1793_v41 = vmul.f32 %v2783_v33, %v2771_v3  ;;  %v2019_v3 = vpop.permute.xlu2 %2018 }
 0x24f   : > { %2680 = vmatpush.xpose.msk.msra.mxu0 %vm1723_vm2, %v1798_v34 }
 0x253   : > { %2681 = vmatpush.xpose.msk.msra.mxu0 %vm1723_vm2, %v1797_v37 }
 0x255   : > { %v1981_v4 = vpop.permute.xlu0 %1980 }
 0x256   : > { %v1976_v19 = vpop.permute.xlu2 %1975 }
 0x257   : > { %2682 = vmatpush.xpose.msk.msra.mxu0 %vm1723_vm2, %v1796_v38 }
 0x25b   : > { %2683 = vmatpush.xpose.msk.msra.mxu0 %vm1723_vm2, %v1795_v39 }
 0x25d   : > { %v2009_v23 = vpop.permute.xlu0 %2008 }
 0x25e   : > { %v2070_v33 = vpop.permute.xlu2 %2069 }
 0x25f   : > { %2684 = vmatpush.xpose.msk.msra.mxu0 %vm1723_vm2, %v1794_v40 }
 0x263   : > { %2685 = vmatpush.xpose.msk.msra.mxu0 %vm1723_vm2, %v1793_v41 }
 0x265   : > { %v2065_v34 = vpop.permute.xlu0 %2064 }
 0x266   : > { %v2079_v37 = vpop.permute.xlu2 %2078 }
 0x267   : > { %2686 = vmatpush.xpose.msk.msra.mxu0 %vm1723_vm2, %v1792_v35 }
 0x26b   : > { %2687 = vmatpush.xpose.msk.msra.mxu0 %vm1723_vm2, %v1791_v36 }
 0x26d   : > { %v2097_v47 = vpop.permute.xlu0 %2096 }
 0x26e   : > { %2688 = vmatmul.msk.f32.vlgmr.msra.gmra.mxu0 %vm1723_vm2, %v3052_v10 }
 0x276   : > { %2689 = vmatmul.msk.f32.gmra.mxu0 %vm1723_vm2, %v3042_v8 }
 0x27e   : > { %2690 = vmatmul.msk.f32.gmra.mxu0 %vm1723_vm2, %v3038_v7 }
 0x286   : > { %2691 = vmatmul.msk.f32.gmra.mxu0 %vm1723_vm2, %v3036_v6 }
 0x29d   : > { %v1916_v61 = vpop.f32.mrf.mxu2 }
 0x2a5   : > { %v1919_v63 = vpop.f32.mrf.mxu2 }
 0x2eb   : > { %v1852_v42 = vpop.f32.mrf.mxu0 }
 0x2ec   : > { %v1871_v55 = vmul.f32 %v1869_v48, %v1852_v42  ;;  %v2084_v42 = vpop.permute.xlu1 %2083 }
 0x2ee   : > { %v1875_v58 = vadd.f32 %v1871_v55, %v3052_v10  ;;  %v1922_v10 = vpop.f32.mrf.mxu2 }
 0x2f3   : > { %v1855_v44 = vpop.f32.mrf.mxu0 }
 0x2f4   : > { %v1872_v53 = vmul.f32 %v1869_v48, %v1855_v44 }
 0x2f6   : > { %v1876_v57 = vadd.f32 %v1872_v53, %v3042_v8  ;;  %v1925_v11 = vpop.f32.mrf.mxu2 }
 0x2fb   : > { %v1858_v46 = vpop.f32.mrf.mxu0 }
 0x2fc   : > { %v1873_v50 = vmul.f32 %v1869_v48, %v1858_v46  ;;  %v2124_v46 = vld [vmem:[%s1267_s11] sm:$0x3] }
 0x2fe   : > { %v1877_v56 = vadd.f32 %v1873_v50, %v3038_v7  ;;  %v1882_v7 = vld [vmem:[%s1225_s30 + $0x18] sm:$0xff]  ;;  %v2129_v50 = vpop.permute.xlu1 %2128 }
 0x303   : > { %v1861_v49 = vpop.f32.mrf.mxu0 }
 0x304   : > { %v1874_v51 = vmul.f32 %v1869_v48, %v1861_v49 }
 0x306   : > { %v1878_v54 = vadd.f32 %v1874_v51, %v3036_v6  ;;  %v1880_v6 = vld [vmem:[%s1225_s30 + $0x8] sm:$0xff]  ;;  %s1286_s30 = sadd.s32 %s3101_s8, %s3401_s7 }
 0x307   : > { %s2644_s1 = sshll.u32 %s1286_s30, 2  ;;  %s2646_s0 = sshll.u32 %s1286_s30, 1 }
 0x308   : > { %1952 = vmatpush.msrb.mxu3 %v1878_v54  ;;  %s1288_s13 = scalar_lea.vmem %s3335_s26, %s2644_s1  ;;  %s1296_s10 = scalar_lea.vmem %s3336_s27, %s2646_s0 }
 0x30a   : > { %1953 = vmatpush.msrb.mxu3 %v1877_v56 }
 0x30c   : > { %1954 = vmatpush.msrb.mxu3 %v1876_v57 }
 0x30e   : > { %1955 = vmatpush.msrb.mxu3 %v1875_v58 }
 0x30f   : > { %2696 = vmatmul.msk.f32.vlgmr.msrb.gmra.mxu3 %vm1368_vm1, %v1879_v59 }
 0x317   : > { %2697 = vmatmul.msk.f32.gmra.mxu3 %vm1368_vm1, %v1880_v6 }
 0x31f   : > { %2698 = vmatmul.msk.f32.gmra.mxu3 %vm1368_vm1, %v1881_v60 }
 0x327   : > { %2699 = vmatmul.msk.f32.gmra.mxu3 %vm1368_vm1, %v1882_v7 }
 0x392   : > { %v1957_v62 = vpop.f32.mrf.mxu3 }
 0x393   : > { %v1958_v14 = vadd.f32 %v1957_v62, %v1916_v61 }
 0x395   : > { %v1993_v20 = vmul.f32 %v1976_v19, %v1958_v14 }
 0x397   : > { %v2021_v28 = vadd.f32 %v2004_v26, %v1993_v20 }
 0x399   : > { %v2025_v30 = vmax.f32 %v2021_v28, 0.0 }
 0x39a   : > { %v1960_v8 = vpop.f32.mrf.mxu3 }
 0x39b   : > { %v1961_v12 = vadd.f32 %v1960_v8, %v1919_v63 }
 0x39d   : > { %v1994_v17 = vmul.f32 %v1981_v4, %v1961_v12 }
 0x39f   : > { %v2022_v25 = vadd.f32 %v2009_v23, %v1994_v17 }
 0x3a1   : > { %v2026_v29 = vmax.f32 %v2022_v25, 0.0 }
 0x3a2   : > { %v1963_v2 = vpop.f32.mrf.mxu3 }
 0x3a3   : > { %v1964_v5 = vadd.f32 %v1963_v2, %v1922_v10 }
 0x3a5   : > { %v1995_v15 = vmul.f32 %v1986_v1, %v1964_v5 }
 0x3a7   : > { %v2023_v22 = vadd.f32 %v2014_v9, %v1995_v15 }
 0x3a9   : > { %v2027_v27 = vmax.f32 %v2023_v22, 0.0 }
 0x3aa   : > { %v1966_v13 = vpop.f32.mrf.mxu3 }
 0x3ab   : > { %v1967_v16 = vadd.f32 %v1966_v13, %v1925_v11 }
 0x3ad   : > { %v1996_v18 = vmul.f32 %v1991_v0, %v1967_v16 }
 0x3af   : > { %v2024_v21 = vadd.f32 %v2019_v3, %v1996_v18 }
 0x3b1   : > { %v2028_v24 = vmax.f32 %v2024_v21, 0.0 }
 0x3b3   : > { %2049 = vmatpush.msrb.mxu0 %v2028_v24 }
 0x3b5   : > { %2050 = vmatpush.msrb.mxu0 %v2027_v27 }
 0x3b7   : > { %2051 = vmatpush.msrb.mxu0 %v2026_v29 }
 0x3b9   : > { %2052 = vmatpush.msrb.mxu0 %v2025_v30 }
 0x3ba   : > { %2700 = vmatmul.msk.f32.vlgmr.msrb.gmra.mxu0 %vm1368_vm1, %v2029_v31 }
 0x3c2   : > { %2701 = vmatmul.msk.f32.gmra.mxu0 %vm1368_vm1, %v2030_v32 }
 0x437   : > { %v2054_v35 = vpop.f32.mrf.mxu0 }
 0x438   : > { %v2072_v36 = vmul.f32 %v2065_v34, %v2054_v35 }
 0x43a   : > { %v2086_v38 = vadd.f32 %v2079_v37, %v2072_v36 }
 0x43c   : > { %v2088_v39 = vmax.f32 %v2086_v38, 0.0 }
 0x43e   : > { %2090 = vst.msk [vmem:[%s1280_s3] sm:$0xff] %vm1723_vm2, %v2088_v39 }
 0x43f   : > { %v2057_v40 = vpop.f32.mrf.mxu0 }
 0x440   : > { %v2073_v41 = vmul.f32 %v2070_v33, %v2057_v40 }
 0x442   : > { %v2087_v43 = vadd.f32 %v2084_v42, %v2073_v41 }
 0x444   : > { %v2089_v44 = vmax.f32 %v2087_v43, 0.0 }
 0x446   : > { %2091 = vst.msk [vmem:[%s1280_s3 + $0x8] sm:$0xff] %vm1723_vm2, %v2089_v44  ;;  %2117 = vmatpush.msra.mxu2 %v2089_v44  ;;  %2149 = vmatpush.msra.mxu3 %v2089_v44 }
 0x447   : > { %2702 = vmatmul.msk.f32.vlgmr.msra.gmra.mxu2 %vm1326_vm0, %v2092_v45 }
 0x448   : > { %2150 = vmatpush.msra.mxu3 %v2088_v39 }
 0x449   : > { %2703 = vmatmul.msk.f32.vlgmr.msra.gmra.mxu3 %vm2131_vm3, %v2124_v46 }
 0x4ca   : > { %v2119_v48 = vpop.f32.mrf.mxu2 }
 0x4cb   : > { %v2120_v49 = vadd.f32 %v2119_v48, %v2097_v47 }
 0x4cc   : > { %v2152_v51 = vpop.f32.mrf.mxu3 }
 0x4cd   : > { %2123 = vst.msk [vmem:[%s1288_s13] sm:$0x7] %vm2122_vm4, %v2120_v49  ;;  %v2153_v52 = vadd.f32 %v2152_v51, %v2129_v50 }
 0x4cf   : > { %2156 = vst.msk [vmem:[%s1296_s10] sm:$0x3] %vm2155_vm5, %v2153_v52 }
 0x4d0 PF: > { %s3387_s7 = sld [smem:[#allocation4_spill]] }
 0x4d1   : > { %s3389_s4 = sld [smem:[#allocation3_spill]] }
 0x4d2   : > { %s3390_s8 = sld [smem:[#allocation5_spill]] }
 0x4d3   : > { %s3391_s30 = sld [smem:[#allocation6_spill]] }
 0x4d6   : > { %s38_s9 = sadd.s32 1, %s3387_s7   ;;  %s3388_s7 = sld [smem:[#allocation2_spill]] }
 0x4d7   : > { %p35_p7 = scmp.ge.s32.totalorder %s38_s9, 14  }
 0x4d9   :  { %37 = sbr.rel (!%p35_p7) target bundleno = 20 (0x14), region = 240 }

// kernel: squeeze.108
= control target key start
LH: loop header
LB: loop body
LE: loop exit
PB: predicated region body
PF: predicated region fallthrough
CT: control target
= control target key end

     0   :  { %s144_s0 = inlined_call_operand.vmem [shape: f32[1,2,2,64], index: 0, kind: input, shape index: {}]   ;;  %s145_s1 = inlined_call_operand.hbm [shape: f32[2,2,8,8], index: 1, kind: output, shape index: {}]  }
   0x1   :  { %v73_v0 = vld [vmem:[%s144_s0 + $0x2] sm:$0x3]  ;;  %v9_v1 = vld [vmem:[%s144_s0] sm:$0x3] }
   0x2   :  { %8 = vst [vmem:[#allocation2 + $0x8] sm:$0x3] %v73_v0 }
   0x3   :  { %10 = vst [vmem:[#allocation2] sm:$0x3] %v9_v1 }
   0x4   :  { %2 = vsyncpa [#allocation1], 0  ;;  %s108_s0 = smov 120   ;;  %s109_s10 = smov 104   ;;  %vm12_vm0 = vcmask 64512  }
   0x5   :  { %s110_s11 = smov 88   ;;  %s111_s12 = smov 112  }
   0x6   :  { %s112_s13 = smov 96   ;;  %s113_s14 = smov 80  }
   0x7   :  { %s114_s15 = smov 72   ;;  %s115_s16 = smov [#allocation0]  }
   0x8   :  { %s64_s17 = sshll.u32 %s115_s16, 4  ;;  %s66_s1 = sshll.u32 %s145_s1, 4  ;;  %s65_s17 = int_to_ptr.vmem [resolvable:$true] %s64_s17  ;;  %s67_s1 = int_to_ptr.hbm [resolvable:$true] %s66_s1 }
   0x9   :  { %v15_v5 = vld [vmem:[#allocation2 + $0x8] sm:$0x3]  }
   0xa   :  { %v19_v2 = vld.sshfl [vmem:[#allocation2] sm:$0xff pattern:$0x99999810]   ;;  %18 = vst.msk [vmem:[#allocation0 + $0x10] ss:$8 sm:$0x3] %vm12_vm0, %v15_v5  }
   0xb   :  { %20 = vrot.lane.b32.xlu0 %v19_v2, %s108_s0  ;;  %32 = vrot.lane.b32.xlu1 %v19_v2, %s109_s10  ;;  %v11_v4 = vld [vmem:[#allocation2] sm:$0x3]  }
   0xc   :  { %44 = vrot.lane.b32.xlu2 %v19_v2, %s110_s11  ;;  %13 = vst.msk [vmem:[#allocation0] ss:$8 sm:$0x3] %vm12_vm0, %v11_v4  }
  0x13   :  { %26 = vrot.lane.b32.xlu0 %v19_v2, %s111_s12  ;;  %38 = vrot.lane.b32.xlu1 %v19_v2, %s112_s13 }
  0x14   :  { %50 = vrot.lane.b32.xlu2 %v19_v2, %s113_s14 }
  0x1b   :  { %56 = vrot.lane.b32.xlu0 %v19_v2, %s114_s15 }
  0x66   :  { %v45_v3 = vpop.permute.xlu2 %44  }
  0x67   :  { %48 = vst.msk [vmem:[#allocation0 + $0x5] ss:$8 sm:$0xf] %vm12_vm0, %v45_v3  }
  0x6e   :  { %v51_v6 = vpop.permute.xlu2 %50  }
  0x6f   :  { %54 = vst.msk [vmem:[#allocation0 + $0x6] ss:$8 sm:$0xf] %vm12_vm0, %v51_v6  }
  0x7d   :  { %v21_v7 = vpop.permute.xlu0 %20   ;;  %v33_v8 = vpop.permute.xlu1 %32  }
  0x7e   :  { %24 = vst.msk [vmem:[#allocation0 + $0x1] ss:$8 sm:$0xf] %vm12_vm0, %v21_v7  }
  0x7f   :  { %36 = vst.msk [vmem:[#allocation0 + $0x3] ss:$8 sm:$0xf] %vm12_vm0, %v33_v8  }
  0x85   :  { %v27_v9 = vpop.permute.xlu0 %26   ;;  %v39_v10 = vpop.permute.xlu1 %38  }
  0x86   :  { %30 = vst.msk [vmem:[#allocation0 + $0x2] ss:$8 sm:$0xf] %vm12_vm0, %v27_v9  }
  0x87   :  { %42 = vst.msk [vmem:[#allocation0 + $0x4] ss:$8 sm:$0xf] %vm12_vm0, %v39_v10  }
  0x8d   :  { %v57_v11 = vpop.permute.xlu0 %56  }
  0x8e   :  { %60 = vst.msk [vmem:[#allocation0 + $0x7] ss:$8 sm:$0xf] %vm12_vm0, %v57_v11  }
  0x8f   :  { %69 = dma.vmem_to_hbm [thread:$0]  %s65_s17, 512, %s67_s1, [#allocation1]  }
  0x90   :  { %106 = dma.done.wait [#allocation1], 512  }
  0x91   :  { %107 = vsyncadd [#allocation1], 4294966784 }
  0x92   :  { %72 = vsyncpa [#allocation1], 1 }

// kernel: part_graph_forward.4
= control target key start
LH: loop header
LB: loop body
LE: loop exit
PB: predicated region body
PF: predicated region fallthrough
CT: control target
= control target key end

     0   :  { %s863_s30 = smov 0   ;;  %s916_s0 = inlined_call_operand.vmem [shape: f32[16,8,128], index: 0, kind: input, shape index: {}]   ;;  %s917_s1 = inlined_call_operand.vmem [shape: f32[16,8,128], index: 1, kind: input, shape index: {}]   ;;  %s918_s2 = inlined_call_operand.vmem [shape: f32[16,16,8], index: 2, kind: input, shape index: {}]   ;;  %s919_s3 = inlined_call_operand.vmem [shape: f32[16,16,8], index: 3, kind: input, shape index: {}]   ;;  %s920_s4 = inlined_call_operand.vmem [shape: f32[16,16,1], index: 4, kind: input, shape index: {}]   ;;  %s921_s5 = inlined_call_operand.vmem [shape: f32[16,16,1], index: 5, kind: input, shape index: {}]   ;;  %s922_s6 = inlined_call_operand.vmem [shape: f32[16,8,16], index: 6, kind: input, shape index: {}]   ;;  %s923_s7 = inlined_call_operand.vmem [shape: f32[16,8,1], index: 7, kind: input, shape index: {}]   ;;  %s924_s8 = inlined_call_operand.vmem [shape: f32[16,8,1], index: 8, kind: input, shape index: {}]   ;;  %s925_s9 = inlined_call_operand.vmem [shape: f32[16,8,128], index: 9, kind: output, shape index: {}]  }
   0x1 LB: > { %s761_s10 = sadd.s32 4294967295, %s810_s30   ;;  %p765_p0 = scmp.ge.s32.totalorder %s810_s30, 1  ;;  %s810_s30 = sphi %s863_s30, %s19_s30  }
   0x2   : > { %p362_p1 = scmp.lt.s32.totalorder %s810_s30, 17 }
   0x4   : > { %p363_p2 = pnand %p765_p0, %p362_p1 }
   0x5   : > { %p432_p3 = scmp.lt.s32.totalorder (!%p363_p2), %s761_s10, 15 }
   0x6   : > { %366 = sbr.rel (%p363_p2) target bundleno = 302 (0x12e), region = 56 }
   0xb   : > { %v812_v0 = vmov 0   ;;  %s927_s10 = smov (!%p432_p3, %s761_s10), 15  ;;  %vm482_vm0 = vcmask 64512   ;;  %vm572_vm1 = vcmask 130048  }
   0xc   : > { %801 = vset.pattern.permute.xlu0 %v812_v0  ;;  %802 = vset.pattern.permute.xlu1 %v812_v0  ;;  %s871_s11 = sshll.u32 %s927_s10, 3  ;;  %s787_s12 = sshll.u32 %s927_s10, 4 }
   0xd   : > { %803 = vset.pattern.permute.xlu2 %v812_v0  ;;  %s439_s15 = scalar_lea.vmem %s917_s1, %s871_s11  ;;  %s435_s18 = scalar_lea.vmem %s916_s0, %s871_s11 }
   0xe   : > { %v477_v1 = vld [vmem:[%s439_s15] sm:$0xff]  ;;  %s449_s21 = scalar_lea.vmem %s919_s3, %s787_s12  ;;  %s444_s24 = scalar_lea.vmem %s918_s2, %s787_s12 }
   0xf   : > { %v476_v2 = vld [vmem:[%s435_s18] sm:$0xff]  ;;  %504 = vmatpush.msra.mxu0 %v477_v1  ;;  %v481_v5 = vld [vmem:[%s449_s21 + $0x8] sm:$0xff]  ;;  %s454_s27 = scalar_lea.vmem %s920_s4, %s787_s12  ;;  %s459_s10 = scalar_lea.vmem %s921_s5, %s787_s12  ;;  %791 = vmatpush.msra.mxu3 %v477_v1 }
  0x10   : > { %533 = vmatpush.msra.mxu1 %v476_v2  ;;  %v480_v3 = vld [vmem:[%s449_s21] sm:$0xff]  ;;  %v542_v6 = vld [vmem:[%s454_s27 + $0x8] sm:$0xff]  ;;  %781 = vmatmul.msk.f32.vlgmr.msra.gmra.mxu3 %vm482_vm0, %v481_v5  ;;  %s467_s14 = scalar_lea.vmem %s923_s7, %s871_s11  ;;  %s471_s17 = scalar_lea.vmem %s924_s8, %s871_s11 }
  0x11   : > { %v478_v4 = vld [vmem:[%s444_s24] sm:$0xff]  ;;  %780 = vmatmul.msk.f32.vlgmr.msra.gmra.mxu0 %vm482_vm0, %v480_v3  ;;  %v556_v7 = vld [vmem:[%s459_s10 + $0x8] sm:$0xff]  ;;  %550 = vperm.xlu0 %801, %v542_v6   ;;  %s463_s20 = scalar_lea.vmem %s922_s6, %s871_s11  ;;  %s475_s23 = scalar_lea.vmem %s925_s9, %s871_s11 }
  0x12   : > { %782 = vmatmul.msk.f32.vlgmr.msra.gmra.mxu1 %vm482_vm0, %v478_v4  ;;  %564 = vperm.xlu1 %802, %v556_v7   ;;  %v479_v8 = vld [vmem:[%s444_s24 + $0x8] sm:$0xff]  ;;  %v541_v9 = vld [vmem:[%s454_s27] sm:$0xff] }
  0x13   : > { %v555_v10 = vld [vmem:[%s459_s10] sm:$0xff] }
  0x14   : > { %v596_v11 = vld [vmem:[%s467_s14] sm:$0xff] }
  0x15   : > { %599 = vperm.xlu2 %803, %v596_v11   ;;  %v603_v12 = vld [vmem:[%s471_s17] sm:$0xff] }
  0x16   : > { %v571_v29 = vld [vmem:[%s463_s20] sm:$0xff] }
  0x19   : > { %545 = vperm.xlu0 %801, %v541_v9  }
  0x1a   : > { %783 = vmatmul.msk.f32.gmra.mxu1 %vm482_vm0, %v479_v8  ;;  %559 = vperm.xlu1 %802, %v555_v10  }
  0x1d   : > { %606 = vperm.xlu2 %803, %v603_v12  }
  0x6f   : > { %v600_v30 = vpop.permute.xlu2 %599 }
  0x77   : > { %v607_v33 = vpop.permute.xlu2 %606 }
  0x83   : > { %v551_v13 = vpop.permute.xlu0 %550 }
  0x84   : > { %v565_v14 = vpop.permute.xlu1 %564 }
  0x8b   : > { %v546_v18 = vpop.permute.xlu0 %545 }
  0x8c   : > { %v560_v23 = vpop.permute.xlu1 %559 }
  0x8e   : > { %v506_v16 = vpop.f32.mrf.mxu0 }
  0x8f   : > { %v535_v15 = vpop.f32.mrf.mxu1 }
  0x90   : > { %v536_v17 = vadd.f32 %v535_v15, %v506_v16 }
  0x92   : > { %v553_v21 = vmul.f32 %v546_v18, %v536_v17 }
  0x93   : > { %v509_v19 = vpop.f32.mrf.mxu3 }
  0x94   : > { %v567_v25 = vadd.f32 %v560_v23, %v553_v21 }
  0x96   : > { %v569_v28 = vmax.f32 %v567_v25, 0.0 }
  0x97   : > { %v538_v20 = vpop.f32.mrf.mxu1 }
  0x98   : > { %v539_v22 = vadd.f32 %v538_v20, %v509_v19 }
  0x9a   : > { %v554_v24 = vmul.f32 %v551_v13, %v539_v22 }
  0x9c   : > { %v568_v26 = vadd.f32 %v565_v14, %v554_v24 }
  0x9e   : > { %v570_v27 = vmax.f32 %v568_v26, 0.0 }
  0xa0   : > { %590 = vmatpush.msra.mxu2 %v570_v27 }
  0xa2   : > { %591 = vmatpush.msra.mxu2 %v569_v28 }
  0xa3   : > { %784 = vmatmul.msk.f32.vlgmr.msra.gmra.mxu2 %vm572_vm1, %v571_v29 }
 0x126   : > { %v593_v31 = vpop.f32.mrf.mxu2 }
 0x127   : > { %v602_v32 = vmul.f32 %v600_v30, %v593_v31 }
 0x129   : > { %v609_v34 = vadd.f32 %v607_v33, %v602_v32 }
 0x12b   : > { %v610_v35 = vmax.f32 %v609_v34, 0.0 }
 0x12d   : > { %611 = vst [vmem:[%s475_s23] sm:$0xff] %v610_v35 }
 0x12e PF: > { %s19_s30 = sadd.s32 1, %s810_s30  }
 0x12f   : > { %p16_p4 = scmp.ge.s32.totalorder %s19_s30, 18  }
 0x131   :  { %18 = sbr.rel (!%p16_p4) target bundleno = 1 (0x1), region = 110 }

// kernel: part_graph_forward.5
= control target key start
LH: loop header
LB: loop body
LE: loop exit
PB: predicated region body
PF: predicated region fallthrough
CT: control target
= control target key end

     0   :  { %s774_s24 = smov 0   ;;  %s827_s0 = inlined_call_operand.vmem [shape: f32[6,8,128], index: 0, kind: input, shape index: {}]   ;;  %s828_s1 = inlined_call_operand.vmem [shape: f32[6,8,128], index: 1, kind: input, shape index: {}]   ;;  %s829_s2 = inlined_call_operand.vmem [shape: f32[6,24,8], index: 2, kind: input, shape index: {}]   ;;  %s830_s3 = inlined_call_operand.vmem [shape: f32[6,16,8], index: 3, kind: input, shape index: {}]   ;;  %s831_s4 = inlined_call_operand.vmem [shape: f32[6,8,8], index: 4, kind: input, shape index: {}]   ;;  %s832_s5 = inlined_call_operand.vmem [shape: f32[6,16,1], index: 5, kind: input, shape index: {}]   ;;  %s833_s6 = inlined_call_operand.vmem [shape: f32[6,8,1], index: 6, kind: input, shape index: {}]   ;;  %s834_s7 = inlined_call_operand.vmem [shape: f32[6,8,128], index: 7, kind: output, shape index: {}]  }
   0x1 LB: > { %s675_s25 = sadd.s32 4294967295, %s731_s24   ;;  %p679_p0 = scmp.ge.s32.totalorder %s731_s24, 1  ;;  %s731_s24 = sphi %s774_s24, %s17_s24  }
   0x2   : > { %p293_p1 = scmp.lt.s32.totalorder %s731_s24, 7 }
   0x4   : > { %p294_p2 = pnand %p679_p0, %p293_p1 }
   0x5   : > { %p350_p3 = scmp.lt.s32.totalorder (!%p294_p2), %s675_s25, 5 }
   0x6   : > { %297 = sbr.rel (%p294_p2) target bundleno = 327 (0x147), region = 48 }
   0xb   : > { %v733_v0 = vmov 0   ;;  %s836_s25 = smov (!%p350_p3, %s675_s25), 5  ;;  %vm390_vm0 = vcmask 64512  }
   0xc   : > { %713 = vset.pattern.permute.xlu0 %v733_v0  ;;  %714 = vset.pattern.permute.xlu1 %v733_v0  ;;  %s782_s26 = sshll.u32 %s836_s25, 3  ;;  %s703_s27 = smul.u32 24, %s836_s25 }
   0xd   : > { %s353_s30 = scalar_lea.vmem %s827_s0, %s782_s26  ;;  %s357_s10 = scalar_lea.vmem %s828_s1, %s782_s26 }
   0xe   : > { %v385_v1 = vld [vmem:[%s353_s30] sm:$0xff]  ;;  %s362_s13 = scalar_lea.vmem %s829_s2, %s703_s27  ;;  %s700_s14 = sshll.u32 %s836_s25, 4 }
   0xf   : > { %v792_v2 = vld [vmem:[%s357_s10] sm:$0xff]  ;;  %415 = vmatpush.msra.mxu0 %v385_v1  ;;  %s367_s17 = scalar_lea.vmem %s830_s3, %s700_s14  ;;  %v388_v4 = vld [vmem:[%s362_s13 + $0x8] sm:$0xff]  ;;  %s376_s20 = scalar_lea.vmem %s832_s5, %s700_s14  ;;  %702 = vmatpush.msra.mxu3 %v385_v1  ;;  %v389_v14 = vld [vmem:[%s362_s13 + $0x10] sm:$0xff] }
  0x10   : > { %449 = vmatpush.msra.mxu1 %v792_v2  ;;  %v387_v3 = vld [vmem:[%s362_s13] sm:$0xff]  ;;  %691 = vmatmul.msk.f32.vlgmr.msra.gmra.mxu3 %vm390_vm0, %v388_v4  ;;  %v427_v7 = vld [vmem:[%s367_s17 + $0x8] sm:$0xff]  ;;  %s380_s23 = scalar_lea.vmem %s833_s6, %s782_s26  ;;  %s371_s28 = scalar_lea.vmem %s831_s4, %s782_s26 }
  0x11   : > { %690 = vmatmul.msk.f32.vlgmr.msra.gmra.mxu0 %vm390_vm0, %v387_v3  ;;  %v426_v5 = vld [vmem:[%s367_s17] sm:$0xff]  ;;  %v460_v8 = vld [vmem:[%s376_s20 + $0x8] sm:$0xff]  ;;  %s384_s8 = scalar_lea.vmem %s834_s7, %s782_s26 }
  0x12   : > { %v459_v6 = vld [vmem:[%s376_s20] sm:$0xff]  ;;  %693 = vmatmul.msk.f32.vlgmr.msra.gmra.mxu1 %vm390_vm0, %v426_v5 }
  0x13   : > { %463 = vperm.xlu0 %713, %v459_v6   ;;  %v537_v15 = vld [vmem:[%s380_s23] sm:$0xff] }
  0x14   : > { %540 = vperm.xlu1 %714, %v537_v15   ;;  %v511_v30 = vld [vmem:[%s371_s28] sm:$0xff] }
  0x18   : > { %692 = vmatmul.msk.f32.gmra.mxu3 %vm390_vm0, %v389_v14 }
  0x1a   : > { %694 = vmatmul.msk.f32.gmra.mxu1 %vm390_vm0, %v427_v7 }
  0x1b   : > { %468 = vperm.xlu0 %713, %v460_v8  }
  0x85   : > { %v464_v12 = vpop.permute.xlu0 %463 }
  0x86   : > { %v541_v47 = vpop.permute.xlu1 %540 }
  0x8d   : > { %v469_v34 = vpop.permute.xlu0 %468 }
  0x8e   : > { %v417_v9 = vpop.f32.mrf.mxu0 }
  0x8f   : > { %v451_v10 = vpop.f32.mrf.mxu1 }
  0x90   : > { %v457_v11 = vadd.f32 %v451_v10, %v417_v9 }
  0x92   : > { %v471_v13 = vadd.f32 %v464_v12, %v457_v11 }
  0x93   : > { %v420_v31 = vpop.f32.mrf.mxu3 }
  0x94   : > { %v695_v16 = vmul.f32 -1.442695, %v471_v13 }
  0x96   : > { %715 = vpow2.f32 %v695_v16 }
  0x97   : > { %v454_v32 = vpop.f32.mrf.mxu1 }
  0x98   : > { %v458_v33 = vadd.f32 %v454_v32, %v420_v31 }
  0x9a   : > { %v472_v35 = vadd.f32 %v469_v34, %v458_v33 }
  0x9b   : > { %v423_v43 = vpop.f32.mrf.mxu3 }
  0x9c   : > { %v716_v17 = vpop.eup %715  ;;  %v696_v36 = vmul.f32 -1.442695, %v472_v35 }
  0x9d   : > { %v479_v18 = vadd.f32 1.0, %v716_v17 }
  0x9f   : > { %717 = vrcp.f32 %v479_v18  ;;  %v492_v22 = vand.u32 2147483648, %v479_v18  ;;  %v490_v24 = vand.u32 2147483647, %v479_v18  ;;  %vm486_vm2 = vweird.f32 %v479_v18 }
  0xa0   : > { %719 = vpow2.f32 %v696_v36 }
  0xa1   : > { %v493_v26 = vor.u32 1.1754944e-38, %v492_v22  ;;  %vm491_vm4 = vcmp.eq.f32.partialorder %v490_v24, 8.507059e+37 }
  0xa5   : > { %v718_v19 = vpop.eup %717 }
  0xa6   : > { %v482_v20 = vmul.f32 %v718_v19, %v479_v18  ;;  %vm487_vm1 = vweird.f32 %v718_v19  ;;  %v720_v37 = vpop.eup %719 }
  0xa7   : > { %vm488_vm3 = vmor %vm486_vm2, %vm487_vm1  ;;  %v480_v38 = vadd.f32 1.0, %v720_v37 }
  0xa8   : > { %v483_v21 = vsub.f32 1.0, %v482_v20 }
  0xa9   : > { %721 = vrcp.f32 %v480_v38  ;;  %v507_v45 = vand.u32 2147483648, %v480_v38  ;;  %vm501_vm6 = vweird.f32 %v480_v38  ;;  %v505_v48 = vand.u32 2147483647, %v480_v38 }
  0xaa   : > { %v484_v23 = vmul.f32 %v718_v19, %v483_v21 }
  0xab   : > { %v508_v51 = vor.u32 1.1754944e-38, %v507_v45  ;;  %vm506_vm8 = vcmp.eq.f32.partialorder %v505_v48, 8.507059e+37 }
  0xac   : > { %v485_v25 = vadd.f32 %v718_v19, %v484_v23 }
  0xae   : > { %v489_v27 = vsel %vm488_vm3, %v718_v19, %v485_v25 }
  0xaf   : > { %v494_v28 = vsel %vm491_vm4, %v493_v26, %v489_v27  ;;  %v722_v39 = vpop.eup %721 }
  0xb0   : > { %v512_v29 = vmul.f32 %v494_v28, %v792_v2  ;;  %v497_v40 = vmul.f32 %v722_v39, %v480_v38  ;;  %vm502_vm5 = vweird.f32 %v722_v39 }
  0xb1   : > { %vm503_vm7 = vmor %vm501_vm6, %vm502_vm5 }
  0xb2   : > { %531 = vmatpush.msra.mxu2 %v512_v29  ;;  %v498_v41 = vsub.f32 1.0, %v497_v40 }
  0xb3   : > { %697 = vmatmul.msk.f32.vlgmr.msra.gmra.mxu2 %vm390_vm0, %v511_v30 }
  0xb4   : > { %v499_v42 = vmul.f32 %v722_v39, %v498_v41 }
  0xb6   : > { %v500_v44 = vadd.f32 %v722_v39, %v499_v42 }
  0xb8   : > { %v504_v50 = vsel %vm503_vm7, %v722_v39, %v500_v44 }
  0xb9   : > { %v509_v53 = vsel %vm506_vm8, %v508_v51, %v504_v50 }
  0xba   : > { %v545_v54 = vsub.f32 1.0, %v509_v53 }
  0xbc   : > { %v546_v56 = vmul.f32 %v545_v54, %v792_v2 }
 0x136   : > { %v533_v46 = vpop.f32.mrf.mxu2 }
 0x137   : > { %v536_v49 = vadd.f32 %v533_v46, %v423_v43 }
 0x139   : > { %v543_v52 = vadd.f32 %v541_v47, %v536_v49 }
 0x13b   : > { %723 = vtanh.f32 %v543_v52 }
 0x141   : > { %v724_v55 = vpop.eup %723 }
 0x142   : > { %v547_v57 = vmul.f32 %v724_v55, %v509_v53 }
 0x144   : > { %v548_v58 = vadd.f32 %v547_v57, %v546_v56 }
 0x146   : > { %549 = vst [vmem:[%s384_s8] sm:$0xff] %v548_v58 }
 0x147 PF: > { %s17_s24 = sadd.s32 1, %s731_s24  }
 0x148   : > { %p14_p4 = scmp.ge.s32.totalorder %s17_s24, 8  }
 0x14a   :  { %16 = sbr.rel (!%p14_p4) target bundleno = 1 (0x1), region = 96 }

</bundles_post_ra>
